<compile_context>
chip_gen: v5e
topology: v5e:2x2
jax: 0.10.0
libtpu: 0.0.40
codegen_flags: <defaults>
</compile_context>

<pallas_src>
import math

import numpy as np
import jax
import jax.numpy as jnp
from jax.experimental import pallas as pl
from jax.experimental.pallas import tpu as pltpu

_BN_EPS = 1e-5


# ---------------------------------------------------------------------------
# in-kernel math helpers (pure value math on (B, C, L); time on the lane axis)
# ---------------------------------------------------------------------------
def _swish(x):
    return x * jax.nn.sigmoid(x)


def _lift(v):
    """(C, k) -> (1, C, k): prepend the batch axis so it broadcasts over batch."""
    return jnp.expand_dims(v, 0)


def _bn_swish(h, gamma, beta, n_count):
    """Training-mode BatchNorm1d (biased variance over batch+time) + Swish.

    h: (B, C, L); gamma/beta: (C, 1).  Conv biases feeding this BN were dropped on
    the host: a per-channel bias is exactly cancelled by the batch-mean subtraction.
    """
    B = h.shape[0]
    inv_n = 1.0 / n_count
    s = jnp.sum(h, axis=2, keepdims=True)                 # (B, C, 1) lane reduce
    tot = s[0:1]
    for b in range(1, B):                                 # leading-dim batch fold
        tot = tot + s[b:b + 1]
    mean = tot * inv_n                                    # (1, C, 1)
    c = h - mean
    v = jnp.sum(c * c, axis=2, keepdims=True)
    vtot = v[0:1]
    for b in range(1, B):
        vtot = vtot + v[b:b + 1]
    var = vtot * inv_n
    a = _lift(gamma) * jax.lax.rsqrt(var + _BN_EPS)       # (1, C, 1)
    y = c * a + _lift(beta)
    return _swish(y)


def _conv1x1_vpu(w, h):
    """Pointwise Conv1d as VPU broadcast-FMAs (no MXU; Cin, Cout <= 9 here).

    w: (Cout, Cin); h: (B, Cin, L) -> (B, Cout, L).
    """
    cin = w.shape[1]
    acc = None
    for ci in range(cin):
        term = _lift(w[:, ci:ci + 1]) * h[:, ci:ci + 1, :]
        acc = term if acc is None else acc + term
    return acc


def _depthwise_vpu(h, w, k, d, l_out):
    """Depthwise dilated Conv1d (groups == channels) as per-tap VPU FMAs.

    h: (B, C, Lp); w: (C, k) -> (B, C, l_out).
    """
    acc = _lift(w[:, 0:1]) * h[:, :, 0:l_out]
    for t in range(1, k):
        acc = acc + _lift(w[:, t:t + 1]) * h[:, :, t * d:t * d + l_out]
    return acc


def _dense_conv_vpu(w, xp, cin, k, d, l_out):
    """First-layer dense dilated Conv1d as VPU FMAs (tiny Cin*k).

    w: (Cout, Cin*k) with column index c*k + t; xp: (B, Cin, Lp) pre-padded.
    """
    acc = None
    for ci in range(cin):
        for t in range(k):
            col = ci * k + t
            term = _lift(w[:, col:col + 1]) * xp[:, ci:ci + 1, t * d:t * d + l_out]
            acc = term if acc is None else acc + term
    return acc


def _pad_time(h, p):
    """ConstantPad1d((p, p), 0) in value space (no VMEM scratch round trip)."""
    z = jnp.zeros(h.shape[:2] + (p,), h.dtype)
    return jnp.concatenate([z, h, z], axis=2)


def _avgpool2(h, l_in):
    """AvgPool1d(kernel=2, stride=2).  The 0.5-averaging matrix is built in-kernel
    from iotas (no operand / DMA); one tiny MXU dot per batch element."""
    l_out = l_in // 2
    r = jax.lax.broadcasted_iota(jnp.int32, (l_in, l_out), 0)
    c = jax.lax.broadcasted_iota(jnp.int32, (l_in, l_out), 1)
    P = jnp.where((r == 2 * c) | (r == 2 * c + 1), 0.5, 0.0).astype(h.dtype)
    return jnp.stack(
        [jnp.dot(h[b], P, preferred_element_type=jnp.float32)
         for b in range(h.shape[0])],
        axis=0)


# ---------------------------------------------------------------------------
# the single fused kernel
# ---------------------------------------------------------------------------
def make_fused_kernel(metas):
    """kernel(x_ref, slab_ref, o_ref): the whole net in one gridless invocation."""

    def kernel(x_ref, slab_ref, o_ref):
        def par(spec):                       # static-sliced view into the packed slab
            rows, c0, c1 = spec
            return slab_ref[0:rows, c0:c1]

        h = x_ref[...]                       # (B, C0, L0 + 2*p0), pre-padded on host
        B = h.shape[0]

        for m in metas:
            k, d, p = m["k"], m["d"], m["p"]
            Lp, Lc = m["Lp"], m["Lc"]

            if m["type"] == "cnnmax":        # dilated conv + BN + Swish
                h = _dense_conv_vpu(par(m["w"]), h, m["in_ch"], k, d, Lc)
                h = _bn_swish(h, par(m["g"]), par(m["b"]), float(B * Lc))
                continue

            # ---- TemporalBlock ----------------------------------------------
            res = h if m["do_res"] else None           # residual taken pre-padding
            hp = _pad_time(h, p)                       # (B, Cin, Lp)

            # 1x1 expand conv + BN + Swish (BN sees the padded steps, like PyTorch)
            h = _conv1x1_vpu(par(m["w1"]), hp)
            h = _bn_swish(h, par(m["g1"]), par(m["b1"]), float(B * Lp))

            # dilated depthwise conv + BN + Swish
            h = _depthwise_vpu(h, par(m["w2"]), k, d, Lc)
            h = _bn_swish(h, par(m["g2"]), par(m["b2"]), float(B * Lc))

            # 1x1 project conv + BN + Swish
            h = _conv1x1_vpu(par(m["w3"]), h)
            h = _bn_swish(h, par(m["g3"]), par(m["b3"]), float(B * Lc))

            if m["do_pool"]:
                h = _avgpool2(h, Lc)
            if m["do_res"]:
                h = _swish(h + res)

        o_ref[...] = h.astype(o_ref.dtype)

    return kernel


# ---------------------------------------------------------------------------
# parameter construction (deterministic, mirrors TemporalConvNet.__init__),
# everything packed into ONE f32 slab so the kernel sees a single param operand.
# ---------------------------------------------------------------------------
def get_padding_size(oi, s, k, d):
    return math.ceil(0.5 * ((oi - 1) * s - oi + k + (k - 1) * (d - 1)))


def _xavier_uniform(key, shape):
    rf = int(np.prod(shape[2:])) if len(shape) > 2 else 1
    fan_in = shape[1] * rf
    fan_out = shape[0] * rf
    bound = math.sqrt(6.0 / (fan_in + fan_out))
    return np.asarray(jax.random.uniform(key, shape, jnp.float32, -bound, bound))


def build_temporal_conv_net(key, num_inputs, kernel_sizes, dilation_sizes,
                            input_scaling, num_channels, first_layer_chn=1):
    """Conv biases are omitted on purpose: every conv is immediately followed by
    training-mode BatchNorm, which cancels a per-channel bias exactly."""
    blocks, col_off = [], 0

    def add(arr):                            # place a block in the packed slab
        nonlocal col_off
        arr = np.asarray(arr, np.float32)
        spec = (arr.shape[0], col_off, col_off + arr.shape[1])
        blocks.append(arr)
        col_off += arr.shape[1]
        return spec

    metas = []
    L = num_inputs
    input_size = num_inputs
    for i, (k, d, scal) in enumerate(zip(kernel_sizes, dilation_sizes, input_scaling)):
        in_ch = first_layer_chn if i == 0 else num_channels[i - 1]
        out_ch = num_channels[i]
        p = get_padding_size(input_size, 1, k, d)
        Lp = L + 2 * p
        Lc = Lp - d * (k - 1)
        max_pooling = scal < 1

        if i == 0:                                     # CNNMax
            key, kw = jax.random.split(key)
            w = _xavier_uniform(kw, (out_ch, in_ch, k)).reshape(out_ch, in_ch * k)
            meta = dict(type="cnnmax", k=k, d=d, p=p, in_ch=in_ch, out_ch=out_ch,
                        Lp=Lp, Lc=Lc, Lout=Lc,
                        w=add(w),
                        g=add(np.ones((out_ch, 1), np.float32)),
                        b=add(np.zeros((out_ch, 1), np.float32)))
        else:                                          # TemporalBlock
            exp_ch = int(1.2 * in_ch)                  # matches PyTorch int() truncation
            do_res = in_ch == out_ch
            groups = exp_ch if do_res else in_ch
            assert not (do_res and max_pooling)
            # TODO(synk): only the depthwise case (groups == exp_ch) is packed; a
            # general grouped conv would need a dense per-tap weight path.
            assert groups == exp_ch, "non-depthwise grouped conv not supported"
            if do_res:
                assert Lc == L, "residual path requires conv output length == input length"
            key, k1, k2, k3 = jax.random.split(key, 4)
            w1 = _xavier_uniform(k1, (exp_ch, in_ch, 1))[:, :, 0]
            w2 = _xavier_uniform(k2, (exp_ch, 1, k))[:, 0, :]
            w3 = _xavier_uniform(k3, (out_ch, exp_ch, 1))[:, :, 0]
            Lout = Lc // 2 if max_pooling else Lc
            meta = dict(type="tblock", k=k, d=d, p=p, in_ch=in_ch, out_ch=out_ch,
                        exp_ch=exp_ch, Lp=Lp, Lc=Lc, Lout=Lout,
                        do_res=do_res, do_pool=max_pooling,
                        w1=add(w1),
                        g1=add(np.ones((exp_ch, 1), np.float32)),
                        b1=add(np.zeros((exp_ch, 1), np.float32)),
                        w2=add(w2),
                        g2=add(np.ones((exp_ch, 1), np.float32)),
                        b2=add(np.zeros((exp_ch, 1), np.float32)),
                        w3=add(w3),
                        g3=add(np.ones((out_ch, 1), np.float32)),
                        b3=add(np.zeros((out_ch, 1), np.float32)))

        metas.append(meta)
        L = meta["Lout"]
        input_size = input_size * scal

    rows = max(blk.shape[0] for blk in blocks)
    slab = np.zeros((rows, col_off), np.float32)
    off = 0
    for blk in blocks:
        slab[:blk.shape[0], off:off + blk.shape[1]] = blk
        off += blk.shape[1]
    return dict(metas=metas, slab=jnp.asarray(slab),
                in_len=num_inputs, in_ch=first_layer_chn)


# ---------------------------------------------------------------------------
# forward pass: one fused, fully VMEM-resident pallas_call (input/output in NCW)
# ---------------------------------------------------------------------------
def temporal_conv_net_forward(x_ncl, net):
    x = x_ncl.astype(jnp.float32)
    B, C0, L0 = x.shape
    assert C0 == net["in_ch"] and L0 == net["in_len"], "input must match build-time config"

    metas = net["metas"]
    slab = net["slab"]
    p0 = metas[0]["p"]
    out_ch, L_out = metas[-1]["out_ch"], metas[-1]["Lout"]

    # layer-0 ConstantPad1d done on the host: one cheap XLA pad instead of an
    # in-kernel zero-fill + masked store into VMEM scratch.
    xs = jnp.pad(x, ((0, 0), (0, 0), (p0, p0)))

    # generation-aware VMEM residency guard (v5e/v6e: 128 MiB physical, v7x: 64 MiB)
    inter = 0
    for m in metas:
        if m["type"] == "cnnmax":
            inter += B * m["out_ch"] * m["Lc"]
        else:
            inter += B * (m["in_ch"] * m["Lp"] + 2 * m["exp_ch"] * m["Lp"]
                          + 2 * m["out_ch"] * m["Lc"])
    footprint = 4 * (xs.size + slab.size + B * out_ch * L_out + inter)
    try:
        vmem_cap = int(pltpu.get_tpu_info().vmem_capacity_bytes)
    except Exception:
        vmem_cap = 64 * 1024 * 1024
    # TODO(synk): for scaled-up configs, switch to a time-tiled grid (BlockSpec
    # pipeline) with a leading 'parallel' axis so v7x's second TensorCore is used;
    # BN then needs a two-pass / cross-core statistics combine.
    assert footprint < vmem_cap // 4, "config too large for the fully-resident kernel"

    # rough cost hint so XLA schedules the surrounding graph sensibly
    flops, trans = 0, 0
    for m in metas:
        if m["type"] == "cnnmax":
            flops += 2 * B * m["out_ch"] * m["in_ch"] * m["k"] * m["Lc"]
            bn = B * m["out_ch"] * m["Lc"]
        else:
            e = m["exp_ch"]
            flops += 2 * B * (e * m["in_ch"] * m["Lp"] + e * m["k"] * m["Lc"]
                              + m["out_ch"] * e * m["Lc"])
            bn = B * (e * m["Lp"] + e * m["Lc"] + m["out_ch"] * m["Lc"])
            if m["do_pool"]:
                flops += 2 * B * m["out_ch"] * m["Lc"]
            if m["do_res"]:
                flops += 2 * B * m["out_ch"] * m["Lout"]
                trans += B * m["out_ch"] * m["Lout"]
        flops += 10 * bn
        trans += bn
    bytes_accessed = 4 * (xs.size + slab.size + B * out_ch * L_out)

    return pl.pallas_call(
        make_fused_kernel(metas),
        out_shape=jax.ShapeDtypeStruct((B, out_ch, L_out), jnp.float32),
        in_specs=[pl.BlockSpec(memory_space=pltpu.MemorySpace.VMEM)] * 2,
        out_specs=pl.BlockSpec(memory_space=pltpu.MemorySpace.VMEM),
        compiler_params=pltpu.CompilerParams(vmem_limit_bytes=32 * 1024 * 1024),
        cost_estimate=pl.CostEstimate(flops=int(flops), transcendentals=int(trans),
                                      bytes_accessed=int(bytes_accessed)),
    )(xs, slab)


# ---------------------------------------------------------------------------
if __name__ == "__main__":
    key = jax.random.PRNGKey(0)
    key, k_x, k_params = jax.random.split(key, 3)

    # TemporalConvNet(num_inputs=64, kernel_sizes=[5,3,3], dilation_sizes=[1,2,4],
    #                 input_scaling=[1,0.5,1], num_channels=[4,8,8],
    #                 conv2d=False, first_layer_chn=1)
    net = build_temporal_conv_net(
        k_params,
        num_inputs=64,
        kernel_sizes=[5, 3, 3],
        dilation_sizes=[1, 2, 4],
        input_scaling=[1, 0.5, 1],
        num_channels=[4, 8, 8],
        first_layer_chn=1,
    )

    # PyTorch-convention input: (batch, channels, length) = (2, 1, 64)
    x = jax.random.normal(k_x, (2, 1, 64), dtype=jnp.float32)

    fwd = jax.jit(lambda xx: temporal_conv_net_forward(xx, net))
    out = jax.block_until_ready(fwd(x))

    assert out.shape == (2, 8, 32), out.shape
    assert bool(jnp.all(jnp.isfinite(out)))
    print("KERNEL_OK")
</pallas_src>

<mosaic_0001>
module attributes {stable_mosaic.version = 11 : i64} {
  func.func @kernel(%arg0: memref<2x1x68xf32, #tpu.memory_space<vmem>>, %arg1: memref<9x50xf32, #tpu.memory_space<vmem>>, %arg2: memref<2x8x32xf32, #tpu.memory_space<vmem>>) attributes {dimension_semantics = [], scalar_prefetch = 0 : i64, scratch_operands = 0 : i64, tpu.core_type = #tpu.core_type<tc>} {
    %c0 = arith.constant 0 : index
    %c0_0 = arith.constant 0 : index
    %c0_1 = arith.constant 0 : index
    %0 = vector.load %arg0[%c0, %c0_0, %c0_1] : memref<2x1x68xf32, #tpu.memory_space<vmem>>, vector<2x1x68xf32>
    %c0_2 = arith.constant 0 : index
    %c0_3 = arith.constant 0 : index
    %1 = vector.load %arg1[%c0_2, %c0_3] : memref<9x50xf32, #tpu.memory_space<vmem>>, vector<4x5xf32>
    %2 = vector.extract_strided_slice %1 {offsets = [0, 0], sizes = [4, 1], strides = [1, 1]} : vector<4x5xf32> to vector<4x1xf32>
    %3 = vector.shape_cast %2 : vector<4x1xf32> to vector<1x4x1xf32>
    %4 = vector.extract_strided_slice %0 {offsets = [0, 0, 0], sizes = [2, 1, 64], strides = [1, 1, 1]} : vector<2x1x68xf32> to vector<2x1x64xf32>
    %5 = vector.broadcast %3 : vector<1x4x1xf32> to vector<2x4x64xf32>
    %6 = vector.broadcast %4 : vector<2x1x64xf32> to vector<2x4x64xf32>
    %7 = arith.mulf %5, %6 : vector<2x4x64xf32>
    %8 = vector.extract_strided_slice %1 {offsets = [0, 1], sizes = [4, 1], strides = [1, 1]} : vector<4x5xf32> to vector<4x1xf32>
    %9 = vector.shape_cast %8 : vector<4x1xf32> to vector<1x4x1xf32>
    %10 = vector.extract_strided_slice %0 {offsets = [0, 0, 1], sizes = [2, 1, 64], strides = [1, 1, 1]} : vector<2x1x68xf32> to vector<2x1x64xf32>
    %11 = vector.broadcast %9 : vector<1x4x1xf32> to vector<2x4x64xf32>
    %12 = vector.broadcast %10 : vector<2x1x64xf32> to vector<2x4x64xf32>
    %13 = arith.mulf %11, %12 : vector<2x4x64xf32>
    %14 = arith.addf %7, %13 : vector<2x4x64xf32>
    %15 = vector.extract_strided_slice %1 {offsets = [0, 2], sizes = [4, 1], strides = [1, 1]} : vector<4x5xf32> to vector<4x1xf32>
    %16 = vector.shape_cast %15 : vector<4x1xf32> to vector<1x4x1xf32>
    %17 = vector.extract_strided_slice %0 {offsets = [0, 0, 2], sizes = [2, 1, 64], strides = [1, 1, 1]} : vector<2x1x68xf32> to vector<2x1x64xf32>
    %18 = vector.broadcast %16 : vector<1x4x1xf32> to vector<2x4x64xf32>
    %19 = vector.broadcast %17 : vector<2x1x64xf32> to vector<2x4x64xf32>
    %20 = arith.mulf %18, %19 : vector<2x4x64xf32>
    %21 = arith.addf %14, %20 : vector<2x4x64xf32>
    %22 = vector.extract_strided_slice %1 {offsets = [0, 3], sizes = [4, 1], strides = [1, 1]} : vector<4x5xf32> to vector<4x1xf32>
    %23 = vector.shape_cast %22 : vector<4x1xf32> to vector<1x4x1xf32>
    %24 = vector.extract_strided_slice %0 {offsets = [0, 0, 3], sizes = [2, 1, 64], strides = [1, 1, 1]} : vector<2x1x68xf32> to vector<2x1x64xf32>
    %25 = vector.broadcast %23 : vector<1x4x1xf32> to vector<2x4x64xf32>
    %26 = vector.broadcast %24 : vector<2x1x64xf32> to vector<2x4x64xf32>
    %27 = arith.mulf %25, %26 : vector<2x4x64xf32>
    %28 = arith.addf %21, %27 : vector<2x4x64xf32>
    %29 = vector.extract_strided_slice %1 {offsets = [0, 4], sizes = [4, 1], strides = [1, 1]} : vector<4x5xf32> to vector<4x1xf32>
    %30 = vector.shape_cast %29 : vector<4x1xf32> to vector<1x4x1xf32>
    %31 = vector.extract_strided_slice %0 {offsets = [0, 0, 4], sizes = [2, 1, 64], strides = [1, 1, 1]} : vector<2x1x68xf32> to vector<2x1x64xf32>
    %32 = vector.broadcast %30 : vector<1x4x1xf32> to vector<2x4x64xf32>
    %33 = vector.broadcast %31 : vector<2x1x64xf32> to vector<2x4x64xf32>
    %34 = arith.mulf %32, %33 : vector<2x4x64xf32>
    %35 = arith.addf %28, %34 : vector<2x4x64xf32>
    %c0_4 = arith.constant 0 : index
    %c5 = arith.constant 5 : index
    %36 = vector.load %arg1[%c0_4, %c5] : memref<9x50xf32, #tpu.memory_space<vmem>>, vector<4x1xf32>
    %c0_5 = arith.constant 0 : index
    %c6 = arith.constant 6 : index
    %37 = vector.load %arg1[%c0_5, %c6] : memref<9x50xf32, #tpu.memory_space<vmem>>, vector<4x1xf32>
    %cst = arith.constant dense<0.000000e+00> : vector<2x4xf32>
    %38 = vector.multi_reduction <add>, %35, %cst [2] : vector<2x4x64xf32> to vector<2x4xf32>
    %39 = vector.shape_cast %38 : vector<2x4xf32> to vector<2x4x1xf32>
    %40 = vector.extract_strided_slice %39 {offsets = [0, 0, 0], sizes = [1, 4, 1], strides = [1, 1, 1]} : vector<2x4x1xf32> to vector<1x4x1xf32>
    %41 = vector.extract_strided_slice %39 {offsets = [1, 0, 0], sizes = [1, 4, 1], strides = [1, 1, 1]} : vector<2x4x1xf32> to vector<1x4x1xf32>
    %42 = arith.addf %40, %41 : vector<1x4x1xf32>
    %cst_6 = arith.constant 7.812500e-03 : f32
    %43 = vector.broadcast %cst_6 : f32 to vector<1x4x1xf32>
    %44 = arith.mulf %42, %43 : vector<1x4x1xf32>
    %45 = vector.broadcast %44 : vector<1x4x1xf32> to vector<2x4x64xf32>
    %46 = arith.subf %35, %45 : vector<2x4x64xf32>
    %47 = arith.mulf %46, %46 : vector<2x4x64xf32>
    %cst_7 = arith.constant dense<0.000000e+00> : vector<2x4xf32>
    %48 = vector.multi_reduction <add>, %47, %cst_7 [2] : vector<2x4x64xf32> to vector<2x4xf32>
    %49 = vector.shape_cast %48 : vector<2x4xf32> to vector<2x4x1xf32>
    %50 = vector.extract_strided_slice %49 {offsets = [0, 0, 0], sizes = [1, 4, 1], strides = [1, 1, 1]} : vector<2x4x1xf32> to vector<1x4x1xf32>
    %51 = vector.extract_strided_slice %49 {offsets = [1, 0, 0], sizes = [1, 4, 1], strides = [1, 1, 1]} : vector<2x4x1xf32> to vector<1x4x1xf32>
    %52 = arith.addf %50, %51 : vector<1x4x1xf32>
    %cst_8 = arith.constant 7.812500e-03 : f32
    %53 = vector.broadcast %cst_8 : f32 to vector<1x4x1xf32>
    %54 = arith.mulf %52, %53 : vector<1x4x1xf32>
    %55 = vector.shape_cast %36 : vector<4x1xf32> to vector<1x4x1xf32>
    %cst_9 = arith.constant 9.99999974E-6 : f32
    %56 = vector.broadcast %cst_9 : f32 to vector<1x4x1xf32>
    %57 = arith.addf %54, %56 : vector<1x4x1xf32>
    %58 = math.rsqrt %57 : vector<1x4x1xf32>
    %59 = arith.mulf %55, %58 : vector<1x4x1xf32>
    %60 = vector.broadcast %59 : vector<1x4x1xf32> to vector<2x4x64xf32>
    %61 = arith.mulf %46, %60 : vector<2x4x64xf32>
    %62 = vector.shape_cast %37 : vector<4x1xf32> to vector<1x4x1xf32>
    %63 = vector.broadcast %62 : vector<1x4x1xf32> to vector<2x4x64xf32>
    %64 = arith.addf %61, %63 : vector<2x4x64xf32>
    %65 = arith.negf %64 : vector<2x4x64xf32>
    %66 = math.exp %65 : vector<2x4x64xf32>
    %cst_10 = arith.constant 1.000000e+00 : f32
    %67 = vector.broadcast %cst_10 : f32 to vector<2x4x64xf32>
    %68 = arith.addf %67, %66 : vector<2x4x64xf32>
    %69 = arith.divf %67, %68 : vector<2x4x64xf32>
    %70 = arith.mulf %64, %69 : vector<2x4x64xf32>
    %cst_11 = arith.constant 0.000000e+00 : f32
    %71 = vector.broadcast %cst_11 : f32 to vector<2x4x2xf32>
    %72 = tpu.concatenate %71, %70, %71 in 2 : vector<2x4x2xf32>, vector<2x4x64xf32>, vector<2x4x2xf32> -> vector<2x4x68xf32>
    %c0_12 = arith.constant 0 : index
    %c7 = arith.constant 7 : index
    %73 = vector.load %arg1[%c0_12, %c7] : memref<9x50xf32, #tpu.memory_space<vmem>>, vector<4x4xf32>
    %74 = vector.extract_strided_slice %73 {offsets = [0, 0], sizes = [4, 1], strides = [1, 1]} : vector<4x4xf32> to vector<4x1xf32>
    %75 = vector.shape_cast %74 : vector<4x1xf32> to vector<1x4x1xf32>
    %76 = vector.extract_strided_slice %72 {offsets = [0, 0, 0], sizes = [2, 1, 68], strides = [1, 1, 1]} : vector<2x4x68xf32> to vector<2x1x68xf32>
    %77 = vector.broadcast %75 : vector<1x4x1xf32> to vector<2x4x68xf32>
    %78 = vector.broadcast %76 : vector<2x1x68xf32> to vector<2x4x68xf32>
    %79 = arith.mulf %77, %78 : vector<2x4x68xf32>
    %80 = vector.extract_strided_slice %73 {offsets = [0, 1], sizes = [4, 1], strides = [1, 1]} : vector<4x4xf32> to vector<4x1xf32>
    %81 = vector.shape_cast %80 : vector<4x1xf32> to vector<1x4x1xf32>
    %82 = vector.extract_strided_slice %72 {offsets = [0, 1, 0], sizes = [2, 1, 68], strides = [1, 1, 1]} : vector<2x4x68xf32> to vector<2x1x68xf32>
    %83 = vector.broadcast %81 : vector<1x4x1xf32> to vector<2x4x68xf32>
    %84 = vector.broadcast %82 : vector<2x1x68xf32> to vector<2x4x68xf32>
    %85 = arith.mulf %83, %84 : vector<2x4x68xf32>
    %86 = arith.addf %79, %85 : vector<2x4x68xf32>
    %87 = vector.extract_strided_slice %73 {offsets = [0, 2], sizes = [4, 1], strides = [1, 1]} : vector<4x4xf32> to vector<4x1xf32>
    %88 = vector.shape_cast %87 : vector<4x1xf32> to vector<1x4x1xf32>
    %89 = vector.extract_strided_slice %72 {offsets = [0, 2, 0], sizes = [2, 1, 68], strides = [1, 1, 1]} : vector<2x4x68xf32> to vector<2x1x68xf32>
    %90 = vector.broadcast %88 : vector<1x4x1xf32> to vector<2x4x68xf32>
    %91 = vector.broadcast %89 : vector<2x1x68xf32> to vector<2x4x68xf32>
    %92 = arith.mulf %90, %91 : vector<2x4x68xf32>
    %93 = arith.addf %86, %92 : vector<2x4x68xf32>
    %94 = vector.extract_strided_slice %73 {offsets = [0, 3], sizes = [4, 1], strides = [1, 1]} : vector<4x4xf32> to vector<4x1xf32>
    %95 = vector.shape_cast %94 : vector<4x1xf32> to vector<1x4x1xf32>
    %96 = vector.extract_strided_slice %72 {offsets = [0, 3, 0], sizes = [2, 1, 68], strides = [1, 1, 1]} : vector<2x4x68xf32> to vector<2x1x68xf32>
    %97 = vector.broadcast %95 : vector<1x4x1xf32> to vector<2x4x68xf32>
    %98 = vector.broadcast %96 : vector<2x1x68xf32> to vector<2x4x68xf32>
    %99 = arith.mulf %97, %98 : vector<2x4x68xf32>
    %100 = arith.addf %93, %99 : vector<2x4x68xf32>
    %c0_13 = arith.constant 0 : index
    %c11 = arith.constant 11 : index
    %101 = vector.load %arg1[%c0_13, %c11] : memref<9x50xf32, #tpu.memory_space<vmem>>, vector<4x1xf32>
    %c0_14 = arith.constant 0 : index
    %c12 = arith.constant 12 : index
    %102 = vector.load %arg1[%c0_14, %c12] : memref<9x50xf32, #tpu.memory_space<vmem>>, vector<4x1xf32>
    %cst_15 = arith.constant dense<0.000000e+00> : vector<2x4xf32>
    %103 = vector.multi_reduction <add>, %100, %cst_15 [2] : vector<2x4x68xf32> to vector<2x4xf32>
    %104 = vector.shape_cast %103 : vector<2x4xf32> to vector<2x4x1xf32>
    %105 = vector.extract_strided_slice %104 {offsets = [0, 0, 0], sizes = [1, 4, 1], strides = [1, 1, 1]} : vector<2x4x1xf32> to vector<1x4x1xf32>
    %106 = vector.extract_strided_slice %104 {offsets = [1, 0, 0], sizes = [1, 4, 1], strides = [1, 1, 1]} : vector<2x4x1xf32> to vector<1x4x1xf32>
    %107 = arith.addf %105, %106 : vector<1x4x1xf32>
    %cst_16 = arith.constant 0.0073529412 : f32
    %108 = vector.broadcast %cst_16 : f32 to vector<1x4x1xf32>
    %109 = arith.mulf %107, %108 : vector<1x4x1xf32>
    %110 = vector.broadcast %109 : vector<1x4x1xf32> to vector<2x4x68xf32>
    %111 = arith.subf %100, %110 : vector<2x4x68xf32>
    %112 = arith.mulf %111, %111 : vector<2x4x68xf32>
    %cst_17 = arith.constant dense<0.000000e+00> : vector<2x4xf32>
    %113 = vector.multi_reduction <add>, %112, %cst_17 [2] : vector<2x4x68xf32> to vector<2x4xf32>
    %114 = vector.shape_cast %113 : vector<2x4xf32> to vector<2x4x1xf32>
    %115 = vector.extract_strided_slice %114 {offsets = [0, 0, 0], sizes = [1, 4, 1], strides = [1, 1, 1]} : vector<2x4x1xf32> to vector<1x4x1xf32>
    %116 = vector.extract_strided_slice %114 {offsets = [1, 0, 0], sizes = [1, 4, 1], strides = [1, 1, 1]} : vector<2x4x1xf32> to vector<1x4x1xf32>
    %117 = arith.addf %115, %116 : vector<1x4x1xf32>
    %cst_18 = arith.constant 0.0073529412 : f32
    %118 = vector.broadcast %cst_18 : f32 to vector<1x4x1xf32>
    %119 = arith.mulf %117, %118 : vector<1x4x1xf32>
    %120 = vector.shape_cast %101 : vector<4x1xf32> to vector<1x4x1xf32>
    %cst_19 = arith.constant 9.99999974E-6 : f32
    %121 = vector.broadcast %cst_19 : f32 to vector<1x4x1xf32>
    %122 = arith.addf %119, %121 : vector<1x4x1xf32>
    %123 = math.rsqrt %122 : vector<1x4x1xf32>
    %124 = arith.mulf %120, %123 : vector<1x4x1xf32>
    %125 = vector.broadcast %124 : vector<1x4x1xf32> to vector<2x4x68xf32>
    %126 = arith.mulf %111, %125 : vector<2x4x68xf32>
    %127 = vector.shape_cast %102 : vector<4x1xf32> to vector<1x4x1xf32>
    %128 = vector.broadcast %127 : vector<1x4x1xf32> to vector<2x4x68xf32>
    %129 = arith.addf %126, %128 : vector<2x4x68xf32>
    %130 = arith.negf %129 : vector<2x4x68xf32>
    %131 = math.exp %130 : vector<2x4x68xf32>
    %cst_20 = arith.constant 1.000000e+00 : f32
    %132 = vector.broadcast %cst_20 : f32 to vector<2x4x68xf32>
    %133 = arith.addf %132, %131 : vector<2x4x68xf32>
    %134 = arith.divf %132, %133 : vector<2x4x68xf32>
    %135 = arith.mulf %129, %134 : vector<2x4x68xf32>
    %c0_21 = arith.constant 0 : index
    %c13 = arith.constant 13 : index
    %136 = vector.load %arg1[%c0_21, %c13] : memref<9x50xf32, #tpu.memory_space<vmem>>, vector<4x3xf32>
    %137 = vector.extract_strided_slice %136 {offsets = [0, 0], sizes = [4, 1], strides = [1, 1]} : vector<4x3xf32> to vector<4x1xf32>
    %138 = vector.shape_cast %137 : vector<4x1xf32> to vector<1x4x1xf32>
    %139 = vector.extract_strided_slice %135 {offsets = [0, 0, 0], sizes = [2, 4, 64], strides = [1, 1, 1]} : vector<2x4x68xf32> to vector<2x4x64xf32>
    %140 = vector.broadcast %138 : vector<1x4x1xf32> to vector<2x4x64xf32>
    %141 = arith.mulf %140, %139 : vector<2x4x64xf32>
    %142 = vector.extract_strided_slice %136 {offsets = [0, 1], sizes = [4, 1], strides = [1, 1]} : vector<4x3xf32> to vector<4x1xf32>
    %143 = vector.shape_cast %142 : vector<4x1xf32> to vector<1x4x1xf32>
    %144 = vector.extract_strided_slice %135 {offsets = [0, 0, 2], sizes = [2, 4, 64], strides = [1, 1, 1]} : vector<2x4x68xf32> to vector<2x4x64xf32>
    %145 = vector.broadcast %143 : vector<1x4x1xf32> to vector<2x4x64xf32>
    %146 = arith.mulf %145, %144 : vector<2x4x64xf32>
    %147 = arith.addf %141, %146 : vector<2x4x64xf32>
    %148 = vector.extract_strided_slice %136 {offsets = [0, 2], sizes = [4, 1], strides = [1, 1]} : vector<4x3xf32> to vector<4x1xf32>
    %149 = vector.shape_cast %148 : vector<4x1xf32> to vector<1x4x1xf32>
    %150 = vector.extract_strided_slice %135 {offsets = [0, 0, 4], sizes = [2, 4, 64], strides = [1, 1, 1]} : vector<2x4x68xf32> to vector<2x4x64xf32>
    %151 = vector.broadcast %149 : vector<1x4x1xf32> to vector<2x4x64xf32>
    %152 = arith.mulf %151, %150 : vector<2x4x64xf32>
    %153 = arith.addf %147, %152 : vector<2x4x64xf32>
    %c0_22 = arith.constant 0 : index
    %c16 = arith.constant 16 : index
    %154 = vector.load %arg1[%c0_22, %c16] : memref<9x50xf32, #tpu.memory_space<vmem>>, vector<4x1xf32>
    %c0_23 = arith.constant 0 : index
    %c17 = arith.constant 17 : index
    %155 = vector.load %arg1[%c0_23, %c17] : memref<9x50xf32, #tpu.memory_space<vmem>>, vector<4x1xf32>
    %cst_24 = arith.constant dense<0.000000e+00> : vector<2x4xf32>
    %156 = vector.multi_reduction <add>, %153, %cst_24 [2] : vector<2x4x64xf32> to vector<2x4xf32>
    %157 = vector.shape_cast %156 : vector<2x4xf32> to vector<2x4x1xf32>
    %158 = vector.extract_strided_slice %157 {offsets = [0, 0, 0], sizes = [1, 4, 1], strides = [1, 1, 1]} : vector<2x4x1xf32> to vector<1x4x1xf32>
    %159 = vector.extract_strided_slice %157 {offsets = [1, 0, 0], sizes = [1, 4, 1], strides = [1, 1, 1]} : vector<2x4x1xf32> to vector<1x4x1xf32>
    %160 = arith.addf %158, %159 : vector<1x4x1xf32>
    %cst_25 = arith.constant 7.812500e-03 : f32
    %161 = vector.broadcast %cst_25 : f32 to vector<1x4x1xf32>
    %162 = arith.mulf %160, %161 : vector<1x4x1xf32>
    %163 = vector.broadcast %162 : vector<1x4x1xf32> to vector<2x4x64xf32>
    %164 = arith.subf %153, %163 : vector<2x4x64xf32>
    %165 = arith.mulf %164, %164 : vector<2x4x64xf32>
    %cst_26 = arith.constant dense<0.000000e+00> : vector<2x4xf32>
    %166 = vector.multi_reduction <add>, %165, %cst_26 [2] : vector<2x4x64xf32> to vector<2x4xf32>
    %167 = vector.shape_cast %166 : vector<2x4xf32> to vector<2x4x1xf32>
    %168 = vector.extract_strided_slice %167 {offsets = [0, 0, 0], sizes = [1, 4, 1], strides = [1, 1, 1]} : vector<2x4x1xf32> to vector<1x4x1xf32>
    %169 = vector.extract_strided_slice %167 {offsets = [1, 0, 0], sizes = [1, 4, 1], strides = [1, 1, 1]} : vector<2x4x1xf32> to vector<1x4x1xf32>
    %170 = arith.addf %168, %169 : vector<1x4x1xf32>
    %cst_27 = arith.constant 7.812500e-03 : f32
    %171 = vector.broadcast %cst_27 : f32 to vector<1x4x1xf32>
    %172 = arith.mulf %170, %171 : vector<1x4x1xf32>
    %173 = vector.shape_cast %154 : vector<4x1xf32> to vector<1x4x1xf32>
    %cst_28 = arith.constant 9.99999974E-6 : f32
    %174 = vector.broadcast %cst_28 : f32 to vector<1x4x1xf32>
    %175 = arith.addf %172, %174 : vector<1x4x1xf32>
    %176 = math.rsqrt %175 : vector<1x4x1xf32>
    %177 = arith.mulf %173, %176 : vector<1x4x1xf32>
    %178 = vector.broadcast %177 : vector<1x4x1xf32> to vector<2x4x64xf32>
    %179 = arith.mulf %164, %178 : vector<2x4x64xf32>
    %180 = vector.shape_cast %155 : vector<4x1xf32> to vector<1x4x1xf32>
    %181 = vector.broadcast %180 : vector<1x4x1xf32> to vector<2x4x64xf32>
    %182 = arith.addf %179, %181 : vector<2x4x64xf32>
    %183 = arith.negf %182 : vector<2x4x64xf32>
    %184 = math.exp %183 : vector<2x4x64xf32>
    %cst_29 = arith.constant 1.000000e+00 : f32
    %185 = vector.broadcast %cst_29 : f32 to vector<2x4x64xf32>
    %186 = arith.addf %185, %184 : vector<2x4x64xf32>
    %187 = arith.divf %185, %186 : vector<2x4x64xf32>
    %188 = arith.mulf %182, %187 : vector<2x4x64xf32>
    %c0_30 = arith.constant 0 : index
    %c18 = arith.constant 18 : index
    %189 = vector.load %arg1[%c0_30, %c18] : memref<9x50xf32, #tpu.memory_space<vmem>>, vector<8x4xf32>
    %190 = vector.extract_strided_slice %189 {offsets = [0, 0], sizes = [8, 1], strides = [1, 1]} : vector<8x4xf32> to vector<8x1xf32>
    %191 = vector.shape_cast %190 : vector<8x1xf32> to vector<1x8x1xf32>
    %192 = vector.extract_strided_slice %188 {offsets = [0, 0, 0], sizes = [2, 1, 64], strides = [1, 1, 1]} : vector<2x4x64xf32> to vector<2x1x64xf32>
    %193 = vector.broadcast %191 : vector<1x8x1xf32> to vector<2x8x64xf32>
    %194 = vector.broadcast %192 : vector<2x1x64xf32> to vector<2x8x64xf32>
    %195 = arith.mulf %193, %194 : vector<2x8x64xf32>
    %196 = vector.extract_strided_slice %189 {offsets = [0, 1], sizes = [8, 1], strides = [1, 1]} : vector<8x4xf32> to vector<8x1xf32>
    %197 = vector.shape_cast %196 : vector<8x1xf32> to vector<1x8x1xf32>
    %198 = vector.extract_strided_slice %188 {offsets = [0, 1, 0], sizes = [2, 1, 64], strides = [1, 1, 1]} : vector<2x4x64xf32> to vector<2x1x64xf32>
    %199 = vector.broadcast %197 : vector<1x8x1xf32> to vector<2x8x64xf32>
    %200 = vector.broadcast %198 : vector<2x1x64xf32> to vector<2x8x64xf32>
    %201 = arith.mulf %199, %200 : vector<2x8x64xf32>
    %202 = arith.addf %195, %201 : vector<2x8x64xf32>
    %203 = vector.extract_strided_slice %189 {offsets = [0, 2], sizes = [8, 1], strides = [1, 1]} : vector<8x4xf32> to vector<8x1xf32>
    %204 = vector.shape_cast %203 : vector<8x1xf32> to vector<1x8x1xf32>
    %205 = vector.extract_strided_slice %188 {offsets = [0, 2, 0], sizes = [2, 1, 64], strides = [1, 1, 1]} : vector<2x4x64xf32> to vector<2x1x64xf32>
    %206 = vector.broadcast %204 : vector<1x8x1xf32> to vector<2x8x64xf32>
    %207 = vector.broadcast %205 : vector<2x1x64xf32> to vector<2x8x64xf32>
    %208 = arith.mulf %206, %207 : vector<2x8x64xf32>
    %209 = arith.addf %202, %208 : vector<2x8x64xf32>
    %210 = vector.extract_strided_slice %189 {offsets = [0, 3], sizes = [8, 1], strides = [1, 1]} : vector<8x4xf32> to vector<8x1xf32>
    %211 = vector.shape_cast %210 : vector<8x1xf32> to vector<1x8x1xf32>
    %212 = vector.extract_strided_slice %188 {offsets = [0, 3, 0], sizes = [2, 1, 64], strides = [1, 1, 1]} : vector<2x4x64xf32> to vector<2x1x64xf32>
    %213 = vector.broadcast %211 : vector<1x8x1xf32> to vector<2x8x64xf32>
    %214 = vector.broadcast %212 : vector<2x1x64xf32> to vector<2x8x64xf32>
    %215 = arith.mulf %213, %214 : vector<2x8x64xf32>
    %216 = arith.addf %209, %215 : vector<2x8x64xf32>
    %c0_31 = arith.constant 0 : index
    %c22 = arith.constant 22 : index
    %217 = vector.load %arg1[%c0_31, %c22] : memref<9x50xf32, #tpu.memory_space<vmem>>, vector<8x1xf32>
    %c0_32 = arith.constant 0 : index
    %c23 = arith.constant 23 : index
    %218 = vector.load %arg1[%c0_32, %c23] : memref<9x50xf32, #tpu.memory_space<vmem>>, vector<8x1xf32>
    %cst_33 = arith.constant dense<0.000000e+00> : vector<2x8xf32>
    %219 = vector.multi_reduction <add>, %216, %cst_33 [2] : vector<2x8x64xf32> to vector<2x8xf32>
    %220 = vector.shape_cast %219 : vector<2x8xf32> to vector<2x8x1xf32>
    %221 = vector.extract_strided_slice %220 {offsets = [0, 0, 0], sizes = [1, 8, 1], strides = [1, 1, 1]} : vector<2x8x1xf32> to vector<1x8x1xf32>
    %222 = vector.extract_strided_slice %220 {offsets = [1, 0, 0], sizes = [1, 8, 1], strides = [1, 1, 1]} : vector<2x8x1xf32> to vector<1x8x1xf32>
    %223 = arith.addf %221, %222 : vector<1x8x1xf32>
    %cst_34 = arith.constant 7.812500e-03 : f32
    %224 = vector.broadcast %cst_34 : f32 to vector<1x8x1xf32>
    %225 = arith.mulf %223, %224 : vector<1x8x1xf32>
    %226 = vector.broadcast %225 : vector<1x8x1xf32> to vector<2x8x64xf32>
    %227 = arith.subf %216, %226 : vector<2x8x64xf32>
    %228 = arith.mulf %227, %227 : vector<2x8x64xf32>
    %cst_35 = arith.constant dense<0.000000e+00> : vector<2x8xf32>
    %229 = vector.multi_reduction <add>, %228, %cst_35 [2] : vector<2x8x64xf32> to vector<2x8xf32>
    %230 = vector.shape_cast %229 : vector<2x8xf32> to vector<2x8x1xf32>
    %231 = vector.extract_strided_slice %230 {offsets = [0, 0, 0], sizes = [1, 8, 1], strides = [1, 1, 1]} : vector<2x8x1xf32> to vector<1x8x1xf32>
    %232 = vector.extract_strided_slice %230 {offsets = [1, 0, 0], sizes = [1, 8, 1], strides = [1, 1, 1]} : vector<2x8x1xf32> to vector<1x8x1xf32>
    %233 = arith.addf %231, %232 : vector<1x8x1xf32>
    %cst_36 = arith.constant 7.812500e-03 : f32
    %234 = vector.broadcast %cst_36 : f32 to vector<1x8x1xf32>
    %235 = arith.mulf %233, %234 : vector<1x8x1xf32>
    %236 = vector.shape_cast %217 : vector<8x1xf32> to vector<1x8x1xf32>
    %cst_37 = arith.constant 9.99999974E-6 : f32
    %237 = vector.broadcast %cst_37 : f32 to vector<1x8x1xf32>
    %238 = arith.addf %235, %237 : vector<1x8x1xf32>
    %239 = math.rsqrt %238 : vector<1x8x1xf32>
    %240 = arith.mulf %236, %239 : vector<1x8x1xf32>
    %241 = vector.broadcast %240 : vector<1x8x1xf32> to vector<2x8x64xf32>
    %242 = arith.mulf %227, %241 : vector<2x8x64xf32>
    %243 = vector.shape_cast %218 : vector<8x1xf32> to vector<1x8x1xf32>
    %244 = vector.broadcast %243 : vector<1x8x1xf32> to vector<2x8x64xf32>
    %245 = arith.addf %242, %244 : vector<2x8x64xf32>
    %246 = arith.negf %245 : vector<2x8x64xf32>
    %247 = math.exp %246 : vector<2x8x64xf32>
    %cst_38 = arith.constant 1.000000e+00 : f32
    %248 = vector.broadcast %cst_38 : f32 to vector<2x8x64xf32>
    %249 = arith.addf %248, %247 : vector<2x8x64xf32>
    %250 = arith.divf %248, %249 : vector<2x8x64xf32>
    %251 = arith.mulf %245, %250 : vector<2x8x64xf32>
    %252 = tpu.iota {dimensions = array<i32: 0>} : vector<64x32xi32>
    %253 = tpu.iota {dimensions = array<i32: 1>} : vector<64x32xi32>
    %c2_i32 = arith.constant 2 : i32
    %254 = vector.broadcast %c2_i32 : i32 to vector<64x32xi32>
    %255 = arith.muli %254, %253 : vector<64x32xi32>
    %256 = arith.cmpi eq, %252, %255 : vector<64x32xi32>
    %c2_i32_39 = arith.constant 2 : i32
    %257 = vector.broadcast %c2_i32_39 : i32 to vector<64x32xi32>
    %258 = arith.muli %257, %253 : vector<64x32xi32>
    %c1_i32 = arith.constant 1 : i32
    %259 = vector.broadcast %c1_i32 : i32 to vector<64x32xi32>
    %260 = arith.addi %258, %259 : vector<64x32xi32>
    %261 = arith.cmpi eq, %252, %260 : vector<64x32xi32>
    %262 = arith.ori %256, %261 : vector<64x32xi1>
    %cst_40 = arith.constant 5.000000e-01 : f32
    %cst_41 = arith.constant 0.000000e+00 : f32
    %263 = vector.broadcast %cst_40 : f32 to vector<64x32xf32>
    %264 = vector.broadcast %cst_41 : f32 to vector<64x32xf32>
    %265 = arith.select %262, %263, %264 : vector<64x32xi1>, vector<64x32xf32>
    %266 = vector.extract_strided_slice %251 {offsets = [0, 0, 0], sizes = [1, 8, 64], strides = [1, 1, 1]} : vector<2x8x64xf32> to vector<1x8x64xf32>
    %267 = vector.shape_cast %266 : vector<1x8x64xf32> to vector<8x64xf32>
    %cst_42 = arith.constant dense<0.000000e+00> : vector<8x32xf32>
    %268 = tpu.matmul %267, %265, %cst_42 {dimension_numbers = #tpu.dot_dimension_numbers<[1], [0], [0], [1], [0, 0, 1, 1], [], []>} : vector<8x64xf32>, vector<64x32xf32>, vector<8x32xf32> -> vector<8x32xf32>
    %269 = vector.extract_strided_slice %251 {offsets = [1, 0, 0], sizes = [1, 8, 64], strides = [1, 1, 1]} : vector<2x8x64xf32> to vector<1x8x64xf32>
    %270 = vector.shape_cast %269 : vector<1x8x64xf32> to vector<8x64xf32>
    %cst_43 = arith.constant dense<0.000000e+00> : vector<8x32xf32>
    %271 = tpu.matmul %270, %265, %cst_43 {dimension_numbers = #tpu.dot_dimension_numbers<[1], [0], [0], [1], [0, 0, 1, 1], [], []>} : vector<8x64xf32>, vector<64x32xf32>, vector<8x32xf32> -> vector<8x32xf32>
    %272 = vector.shape_cast %268 : vector<8x32xf32> to vector<1x8x32xf32>
    %273 = vector.shape_cast %271 : vector<8x32xf32> to vector<1x8x32xf32>
    %274 = tpu.concatenate %272, %273 in 0 : vector<1x8x32xf32>, vector<1x8x32xf32> -> vector<2x8x32xf32>
    %cst_44 = arith.constant 0.000000e+00 : f32
    %275 = vector.broadcast %cst_44 : f32 to vector<2x8x4xf32>
    %276 = tpu.concatenate %275, %274, %275 in 2 : vector<2x8x4xf32>, vector<2x8x32xf32>, vector<2x8x4xf32> -> vector<2x8x40xf32>
    %c0_45 = arith.constant 0 : index
    %c24 = arith.constant 24 : index
    %277 = vector.load %arg1[%c0_45, %c24] : memref<9x50xf32, #tpu.memory_space<vmem>>, vector<9x8xf32>
    %278 = vector.extract_strided_slice %277 {offsets = [0, 0], sizes = [9, 1], strides = [1, 1]} : vector<9x8xf32> to vector<9x1xf32>
    %279 = vector.shape_cast %278 : vector<9x1xf32> to vector<1x9x1xf32>
    %280 = vector.extract_strided_slice %276 {offsets = [0, 0, 0], sizes = [2, 1, 40], strides = [1, 1, 1]} : vector<2x8x40xf32> to vector<2x1x40xf32>
    %281 = vector.broadcast %279 : vector<1x9x1xf32> to vector<2x9x40xf32>
    %282 = vector.broadcast %280 : vector<2x1x40xf32> to vector<2x9x40xf32>
    %283 = arith.mulf %281, %282 : vector<2x9x40xf32>
    %284 = vector.extract_strided_slice %277 {offsets = [0, 1], sizes = [9, 1], strides = [1, 1]} : vector<9x8xf32> to vector<9x1xf32>
    %285 = vector.shape_cast %284 : vector<9x1xf32> to vector<1x9x1xf32>
    %286 = vector.extract_strided_slice %276 {offsets = [0, 1, 0], sizes = [2, 1, 40], strides = [1, 1, 1]} : vector<2x8x40xf32> to vector<2x1x40xf32>
    %287 = vector.broadcast %285 : vector<1x9x1xf32> to vector<2x9x40xf32>
    %288 = vector.broadcast %286 : vector<2x1x40xf32> to vector<2x9x40xf32>
    %289 = arith.mulf %287, %288 : vector<2x9x40xf32>
    %290 = arith.addf %283, %289 : vector<2x9x40xf32>
    %291 = vector.extract_strided_slice %277 {offsets = [0, 2], sizes = [9, 1], strides = [1, 1]} : vector<9x8xf32> to vector<9x1xf32>
    %292 = vector.shape_cast %291 : vector<9x1xf32> to vector<1x9x1xf32>
    %293 = vector.extract_strided_slice %276 {offsets = [0, 2, 0], sizes = [2, 1, 40], strides = [1, 1, 1]} : vector<2x8x40xf32> to vector<2x1x40xf32>
    %294 = vector.broadcast %292 : vector<1x9x1xf32> to vector<2x9x40xf32>
    %295 = vector.broadcast %293 : vector<2x1x40xf32> to vector<2x9x40xf32>
    %296 = arith.mulf %294, %295 : vector<2x9x40xf32>
    %297 = arith.addf %290, %296 : vector<2x9x40xf32>
    %298 = vector.extract_strided_slice %277 {offsets = [0, 3], sizes = [9, 1], strides = [1, 1]} : vector<9x8xf32> to vector<9x1xf32>
    %299 = vector.shape_cast %298 : vector<9x1xf32> to vector<1x9x1xf32>
    %300 = vector.extract_strided_slice %276 {offsets = [0, 3, 0], sizes = [2, 1, 40], strides = [1, 1, 1]} : vector<2x8x40xf32> to vector<2x1x40xf32>
    %301 = vector.broadcast %299 : vector<1x9x1xf32> to vector<2x9x40xf32>
    %302 = vector.broadcast %300 : vector<2x1x40xf32> to vector<2x9x40xf32>
    %303 = arith.mulf %301, %302 : vector<2x9x40xf32>
    %304 = arith.addf %297, %303 : vector<2x9x40xf32>
    %305 = vector.extract_strided_slice %277 {offsets = [0, 4], sizes = [9, 1], strides = [1, 1]} : vector<9x8xf32> to vector<9x1xf32>
    %306 = vector.shape_cast %305 : vector<9x1xf32> to vector<1x9x1xf32>
    %307 = vector.extract_strided_slice %276 {offsets = [0, 4, 0], sizes = [2, 1, 40], strides = [1, 1, 1]} : vector<2x8x40xf32> to vector<2x1x40xf32>
    %308 = vector.broadcast %306 : vector<1x9x1xf32> to vector<2x9x40xf32>
    %309 = vector.broadcast %307 : vector<2x1x40xf32> to vector<2x9x40xf32>
    %310 = arith.mulf %308, %309 : vector<2x9x40xf32>
    %311 = arith.addf %304, %310 : vector<2x9x40xf32>
    %312 = vector.extract_strided_slice %277 {offsets = [0, 5], sizes = [9, 1], strides = [1, 1]} : vector<9x8xf32> to vector<9x1xf32>
    %313 = vector.shape_cast %312 : vector<9x1xf32> to vector<1x9x1xf32>
    %314 = vector.extract_strided_slice %276 {offsets = [0, 5, 0], sizes = [2, 1, 40], strides = [1, 1, 1]} : vector<2x8x40xf32> to vector<2x1x40xf32>
    %315 = vector.broadcast %313 : vector<1x9x1xf32> to vector<2x9x40xf32>
    %316 = vector.broadcast %314 : vector<2x1x40xf32> to vector<2x9x40xf32>
    %317 = arith.mulf %315, %316 : vector<2x9x40xf32>
    %318 = arith.addf %311, %317 : vector<2x9x40xf32>
    %319 = vector.extract_strided_slice %277 {offsets = [0, 6], sizes = [9, 1], strides = [1, 1]} : vector<9x8xf32> to vector<9x1xf32>
    %320 = vector.shape_cast %319 : vector<9x1xf32> to vector<1x9x1xf32>
    %321 = vector.extract_strided_slice %276 {offsets = [0, 6, 0], sizes = [2, 1, 40], strides = [1, 1, 1]} : vector<2x8x40xf32> to vector<2x1x40xf32>
    %322 = vector.broadcast %320 : vector<1x9x1xf32> to vector<2x9x40xf32>
    %323 = vector.broadcast %321 : vector<2x1x40xf32> to vector<2x9x40xf32>
    %324 = arith.mulf %322, %323 : vector<2x9x40xf32>
    %325 = arith.addf %318, %324 : vector<2x9x40xf32>
    %326 = vector.extract_strided_slice %277 {offsets = [0, 7], sizes = [9, 1], strides = [1, 1]} : vector<9x8xf32> to vector<9x1xf32>
    %327 = vector.shape_cast %326 : vector<9x1xf32> to vector<1x9x1xf32>
    %328 = vector.extract_strided_slice %276 {offsets = [0, 7, 0], sizes = [2, 1, 40], strides = [1, 1, 1]} : vector<2x8x40xf32> to vector<2x1x40xf32>
    %329 = vector.broadcast %327 : vector<1x9x1xf32> to vector<2x9x40xf32>
    %330 = vector.broadcast %328 : vector<2x1x40xf32> to vector<2x9x40xf32>
    %331 = arith.mulf %329, %330 : vector<2x9x40xf32>
    %332 = arith.addf %325, %331 : vector<2x9x40xf32>
    %c0_46 = arith.constant 0 : index
    %c32 = arith.constant 32 : index
    %333 = vector.load %arg1[%c0_46, %c32] : memref<9x50xf32, #tpu.memory_space<vmem>>, vector<9x1xf32>
    %c0_47 = arith.constant 0 : index
    %c33 = arith.constant 33 : index
    %334 = vector.load %arg1[%c0_47, %c33] : memref<9x50xf32, #tpu.memory_space<vmem>>, vector<9x1xf32>
    %cst_48 = arith.constant dense<0.000000e+00> : vector<2x9xf32>
    %335 = vector.multi_reduction <add>, %332, %cst_48 [2] : vector<2x9x40xf32> to vector<2x9xf32>
    %336 = vector.shape_cast %335 : vector<2x9xf32> to vector<2x9x1xf32>
    %337 = vector.extract_strided_slice %336 {offsets = [0, 0, 0], sizes = [1, 9, 1], strides = [1, 1, 1]} : vector<2x9x1xf32> to vector<1x9x1xf32>
    %338 = vector.extract_strided_slice %336 {offsets = [1, 0, 0], sizes = [1, 9, 1], strides = [1, 1, 1]} : vector<2x9x1xf32> to vector<1x9x1xf32>
    %339 = arith.addf %337, %338 : vector<1x9x1xf32>
    %cst_49 = arith.constant 1.250000e-02 : f32
    %340 = vector.broadcast %cst_49 : f32 to vector<1x9x1xf32>
    %341 = arith.mulf %339, %340 : vector<1x9x1xf32>
    %342 = vector.broadcast %341 : vector<1x9x1xf32> to vector<2x9x40xf32>
    %343 = arith.subf %332, %342 : vector<2x9x40xf32>
    %344 = arith.mulf %343, %343 : vector<2x9x40xf32>
    %cst_50 = arith.constant dense<0.000000e+00> : vector<2x9xf32>
    %345 = vector.multi_reduction <add>, %344, %cst_50 [2] : vector<2x9x40xf32> to vector<2x9xf32>
    %346 = vector.shape_cast %345 : vector<2x9xf32> to vector<2x9x1xf32>
    %347 = vector.extract_strided_slice %346 {offsets = [0, 0, 0], sizes = [1, 9, 1], strides = [1, 1, 1]} : vector<2x9x1xf32> to vector<1x9x1xf32>
    %348 = vector.extract_strided_slice %346 {offsets = [1, 0, 0], sizes = [1, 9, 1], strides = [1, 1, 1]} : vector<2x9x1xf32> to vector<1x9x1xf32>
    %349 = arith.addf %347, %348 : vector<1x9x1xf32>
    %cst_51 = arith.constant 1.250000e-02 : f32
    %350 = vector.broadcast %cst_51 : f32 to vector<1x9x1xf32>
    %351 = arith.mulf %349, %350 : vector<1x9x1xf32>
    %352 = vector.shape_cast %333 : vector<9x1xf32> to vector<1x9x1xf32>
    %cst_52 = arith.constant 9.99999974E-6 : f32
    %353 = vector.broadcast %cst_52 : f32 to vector<1x9x1xf32>
    %354 = arith.addf %351, %353 : vector<1x9x1xf32>
    %355 = math.rsqrt %354 : vector<1x9x1xf32>
    %356 = arith.mulf %352, %355 : vector<1x9x1xf32>
    %357 = vector.broadcast %356 : vector<1x9x1xf32> to vector<2x9x40xf32>
    %358 = arith.mulf %343, %357 : vector<2x9x40xf32>
    %359 = vector.shape_cast %334 : vector<9x1xf32> to vector<1x9x1xf32>
    %360 = vector.broadcast %359 : vector<1x9x1xf32> to vector<2x9x40xf32>
    %361 = arith.addf %358, %360 : vector<2x9x40xf32>
    %362 = arith.negf %361 : vector<2x9x40xf32>
    %363 = math.exp %362 : vector<2x9x40xf32>
    %cst_53 = arith.constant 1.000000e+00 : f32
    %364 = vector.broadcast %cst_53 : f32 to vector<2x9x40xf32>
    %365 = arith.addf %364, %363 : vector<2x9x40xf32>
    %366 = arith.divf %364, %365 : vector<2x9x40xf32>
    %367 = arith.mulf %361, %366 : vector<2x9x40xf32>
    %c0_54 = arith.constant 0 : index
    %c34 = arith.constant 34 : index
    %368 = vector.load %arg1[%c0_54, %c34] : memref<9x50xf32, #tpu.memory_space<vmem>>, vector<9x3xf32>
    %369 = vector.extract_strided_slice %368 {offsets = [0, 0], sizes = [9, 1], strides = [1, 1]} : vector<9x3xf32> to vector<9x1xf32>
    %370 = vector.shape_cast %369 : vector<9x1xf32> to vector<1x9x1xf32>
    %371 = vector.extract_strided_slice %367 {offsets = [0, 0, 0], sizes = [2, 9, 32], strides = [1, 1, 1]} : vector<2x9x40xf32> to vector<2x9x32xf32>
    %372 = vector.broadcast %370 : vector<1x9x1xf32> to vector<2x9x32xf32>
    %373 = arith.mulf %372, %371 : vector<2x9x32xf32>
    %374 = vector.extract_strided_slice %368 {offsets = [0, 1], sizes = [9, 1], strides = [1, 1]} : vector<9x3xf32> to vector<9x1xf32>
    %375 = vector.shape_cast %374 : vector<9x1xf32> to vector<1x9x1xf32>
    %376 = vector.extract_strided_slice %367 {offsets = [0, 0, 4], sizes = [2, 9, 32], strides = [1, 1, 1]} : vector<2x9x40xf32> to vector<2x9x32xf32>
    %377 = vector.broadcast %375 : vector<1x9x1xf32> to vector<2x9x32xf32>
    %378 = arith.mulf %377, %376 : vector<2x9x32xf32>
    %379 = arith.addf %373, %378 : vector<2x9x32xf32>
    %380 = vector.extract_strided_slice %368 {offsets = [0, 2], sizes = [9, 1], strides = [1, 1]} : vector<9x3xf32> to vector<9x1xf32>
    %381 = vector.shape_cast %380 : vector<9x1xf32> to vector<1x9x1xf32>
    %382 = vector.extract_strided_slice %367 {offsets = [0, 0, 8], sizes = [2, 9, 32], strides = [1, 1, 1]} : vector<2x9x40xf32> to vector<2x9x32xf32>
    %383 = vector.broadcast %381 : vector<1x9x1xf32> to vector<2x9x32xf32>
    %384 = arith.mulf %383, %382 : vector<2x9x32xf32>
    %385 = arith.addf %379, %384 : vector<2x9x32xf32>
    %c0_55 = arith.constant 0 : index
    %c37 = arith.constant 37 : index
    %386 = vector.load %arg1[%c0_55, %c37] : memref<9x50xf32, #tpu.memory_space<vmem>>, vector<9x1xf32>
    %c0_56 = arith.constant 0 : index
    %c38 = arith.constant 38 : index
    %387 = vector.load %arg1[%c0_56, %c38] : memref<9x50xf32, #tpu.memory_space<vmem>>, vector<9x1xf32>
    %cst_57 = arith.constant dense<0.000000e+00> : vector<2x9xf32>
    %388 = vector.multi_reduction <add>, %385, %cst_57 [2] : vector<2x9x32xf32> to vector<2x9xf32>
    %389 = vector.shape_cast %388 : vector<2x9xf32> to vector<2x9x1xf32>
    %390 = vector.extract_strided_slice %389 {offsets = [0, 0, 0], sizes = [1, 9, 1], strides = [1, 1, 1]} : vector<2x9x1xf32> to vector<1x9x1xf32>
    %391 = vector.extract_strided_slice %389 {offsets = [1, 0, 0], sizes = [1, 9, 1], strides = [1, 1, 1]} : vector<2x9x1xf32> to vector<1x9x1xf32>
    %392 = arith.addf %390, %391 : vector<1x9x1xf32>
    %cst_58 = arith.constant 1.562500e-02 : f32
    %393 = vector.broadcast %cst_58 : f32 to vector<1x9x1xf32>
    %394 = arith.mulf %392, %393 : vector<1x9x1xf32>
    %395 = vector.broadcast %394 : vector<1x9x1xf32> to vector<2x9x32xf32>
    %396 = arith.subf %385, %395 : vector<2x9x32xf32>
    %397 = arith.mulf %396, %396 : vector<2x9x32xf32>
    %cst_59 = arith.constant dense<0.000000e+00> : vector<2x9xf32>
    %398 = vector.multi_reduction <add>, %397, %cst_59 [2] : vector<2x9x32xf32> to vector<2x9xf32>
    %399 = vector.shape_cast %398 : vector<2x9xf32> to vector<2x9x1xf32>
    %400 = vector.extract_strided_slice %399 {offsets = [0, 0, 0], sizes = [1, 9, 1], strides = [1, 1, 1]} : vector<2x9x1xf32> to vector<1x9x1xf32>
    %401 = vector.extract_strided_slice %399 {offsets = [1, 0, 0], sizes = [1, 9, 1], strides = [1, 1, 1]} : vector<2x9x1xf32> to vector<1x9x1xf32>
    %402 = arith.addf %400, %401 : vector<1x9x1xf32>
    %cst_60 = arith.constant 1.562500e-02 : f32
    %403 = vector.broadcast %cst_60 : f32 to vector<1x9x1xf32>
    %404 = arith.mulf %402, %403 : vector<1x9x1xf32>
    %405 = vector.shape_cast %386 : vector<9x1xf32> to vector<1x9x1xf32>
    %cst_61 = arith.constant 9.99999974E-6 : f32
    %406 = vector.broadcast %cst_61 : f32 to vector<1x9x1xf32>
    %407 = arith.addf %404, %406 : vector<1x9x1xf32>
    %408 = math.rsqrt %407 : vector<1x9x1xf32>
    %409 = arith.mulf %405, %408 : vector<1x9x1xf32>
    %410 = vector.broadcast %409 : vector<1x9x1xf32> to vector<2x9x32xf32>
    %411 = arith.mulf %396, %410 : vector<2x9x32xf32>
    %412 = vector.shape_cast %387 : vector<9x1xf32> to vector<1x9x1xf32>
    %413 = vector.broadcast %412 : vector<1x9x1xf32> to vector<2x9x32xf32>
    %414 = arith.addf %411, %413 : vector<2x9x32xf32>
    %415 = arith.negf %414 : vector<2x9x32xf32>
    %416 = math.exp %415 : vector<2x9x32xf32>
    %cst_62 = arith.constant 1.000000e+00 : f32
    %417 = vector.broadcast %cst_62 : f32 to vector<2x9x32xf32>
    %418 = arith.addf %417, %416 : vector<2x9x32xf32>
    %419 = arith.divf %417, %418 : vector<2x9x32xf32>
    %420 = arith.mulf %414, %419 : vector<2x9x32xf32>
    %c0_63 = arith.constant 0 : index
    %c39 = arith.constant 39 : index
    %421 = vector.load %arg1[%c0_63, %c39] : memref<9x50xf32, #tpu.memory_space<vmem>>, vector<8x9xf32>
    %422 = vector.extract_strided_slice %421 {offsets = [0, 0], sizes = [8, 1], strides = [1, 1]} : vector<8x9xf32> to vector<8x1xf32>
    %423 = vector.shape_cast %422 : vector<8x1xf32> to vector<1x8x1xf32>
    %424 = vector.extract_strided_slice %420 {offsets = [0, 0, 0], sizes = [2, 1, 32], strides = [1, 1, 1]} : vector<2x9x32xf32> to vector<2x1x32xf32>
    %425 = vector.broadcast %423 : vector<1x8x1xf32> to vector<2x8x32xf32>
    %426 = vector.broadcast %424 : vector<2x1x32xf32> to vector<2x8x32xf32>
    %427 = arith.mulf %425, %426 : vector<2x8x32xf32>
    %428 = vector.extract_strided_slice %421 {offsets = [0, 1], sizes = [8, 1], strides = [1, 1]} : vector<8x9xf32> to vector<8x1xf32>
    %429 = vector.shape_cast %428 : vector<8x1xf32> to vector<1x8x1xf32>
    %430 = vector.extract_strided_slice %420 {offsets = [0, 1, 0], sizes = [2, 1, 32], strides = [1, 1, 1]} : vector<2x9x32xf32> to vector<2x1x32xf32>
    %431 = vector.broadcast %429 : vector<1x8x1xf32> to vector<2x8x32xf32>
    %432 = vector.broadcast %430 : vector<2x1x32xf32> to vector<2x8x32xf32>
    %433 = arith.mulf %431, %432 : vector<2x8x32xf32>
    %434 = arith.addf %427, %433 : vector<2x8x32xf32>
    %435 = vector.extract_strided_slice %421 {offsets = [0, 2], sizes = [8, 1], strides = [1, 1]} : vector<8x9xf32> to vector<8x1xf32>
    %436 = vector.shape_cast %435 : vector<8x1xf32> to vector<1x8x1xf32>
    %437 = vector.extract_strided_slice %420 {offsets = [0, 2, 0], sizes = [2, 1, 32], strides = [1, 1, 1]} : vector<2x9x32xf32> to vector<2x1x32xf32>
    %438 = vector.broadcast %436 : vector<1x8x1xf32> to vector<2x8x32xf32>
    %439 = vector.broadcast %437 : vector<2x1x32xf32> to vector<2x8x32xf32>
    %440 = arith.mulf %438, %439 : vector<2x8x32xf32>
    %441 = arith.addf %434, %440 : vector<2x8x32xf32>
    %442 = vector.extract_strided_slice %421 {offsets = [0, 3], sizes = [8, 1], strides = [1, 1]} : vector<8x9xf32> to vector<8x1xf32>
    %443 = vector.shape_cast %442 : vector<8x1xf32> to vector<1x8x1xf32>
    %444 = vector.extract_strided_slice %420 {offsets = [0, 3, 0], sizes = [2, 1, 32], strides = [1, 1, 1]} : vector<2x9x32xf32> to vector<2x1x32xf32>
    %445 = vector.broadcast %443 : vector<1x8x1xf32> to vector<2x8x32xf32>
    %446 = vector.broadcast %444 : vector<2x1x32xf32> to vector<2x8x32xf32>
    %447 = arith.mulf %445, %446 : vector<2x8x32xf32>
    %448 = arith.addf %441, %447 : vector<2x8x32xf32>
    %449 = vector.extract_strided_slice %421 {offsets = [0, 4], sizes = [8, 1], strides = [1, 1]} : vector<8x9xf32> to vector<8x1xf32>
    %450 = vector.shape_cast %449 : vector<8x1xf32> to vector<1x8x1xf32>
    %451 = vector.extract_strided_slice %420 {offsets = [0, 4, 0], sizes = [2, 1, 32], strides = [1, 1, 1]} : vector<2x9x32xf32> to vector<2x1x32xf32>
    %452 = vector.broadcast %450 : vector<1x8x1xf32> to vector<2x8x32xf32>
    %453 = vector.broadcast %451 : vector<2x1x32xf32> to vector<2x8x32xf32>
    %454 = arith.mulf %452, %453 : vector<2x8x32xf32>
    %455 = arith.addf %448, %454 : vector<2x8x32xf32>
    %456 = vector.extract_strided_slice %421 {offsets = [0, 5], sizes = [8, 1], strides = [1, 1]} : vector<8x9xf32> to vector<8x1xf32>
    %457 = vector.shape_cast %456 : vector<8x1xf32> to vector<1x8x1xf32>
    %458 = vector.extract_strided_slice %420 {offsets = [0, 5, 0], sizes = [2, 1, 32], strides = [1, 1, 1]} : vector<2x9x32xf32> to vector<2x1x32xf32>
    %459 = vector.broadcast %457 : vector<1x8x1xf32> to vector<2x8x32xf32>
    %460 = vector.broadcast %458 : vector<2x1x32xf32> to vector<2x8x32xf32>
    %461 = arith.mulf %459, %460 : vector<2x8x32xf32>
    %462 = arith.addf %455, %461 : vector<2x8x32xf32>
    %463 = vector.extract_strided_slice %421 {offsets = [0, 6], sizes = [8, 1], strides = [1, 1]} : vector<8x9xf32> to vector<8x1xf32>
    %464 = vector.shape_cast %463 : vector<8x1xf32> to vector<1x8x1xf32>
    %465 = vector.extract_strided_slice %420 {offsets = [0, 6, 0], sizes = [2, 1, 32], strides = [1, 1, 1]} : vector<2x9x32xf32> to vector<2x1x32xf32>
    %466 = vector.broadcast %464 : vector<1x8x1xf32> to vector<2x8x32xf32>
    %467 = vector.broadcast %465 : vector<2x1x32xf32> to vector<2x8x32xf32>
    %468 = arith.mulf %466, %467 : vector<2x8x32xf32>
    %469 = arith.addf %462, %468 : vector<2x8x32xf32>
    %470 = vector.extract_strided_slice %421 {offsets = [0, 7], sizes = [8, 1], strides = [1, 1]} : vector<8x9xf32> to vector<8x1xf32>
    %471 = vector.shape_cast %470 : vector<8x1xf32> to vector<1x8x1xf32>
    %472 = vector.extract_strided_slice %420 {offsets = [0, 7, 0], sizes = [2, 1, 32], strides = [1, 1, 1]} : vector<2x9x32xf32> to vector<2x1x32xf32>
    %473 = vector.broadcast %471 : vector<1x8x1xf32> to vector<2x8x32xf32>
    %474 = vector.broadcast %472 : vector<2x1x32xf32> to vector<2x8x32xf32>
    %475 = arith.mulf %473, %474 : vector<2x8x32xf32>
    %476 = arith.addf %469, %475 : vector<2x8x32xf32>
    %477 = vector.extract_strided_slice %421 {offsets = [0, 8], sizes = [8, 1], strides = [1, 1]} : vector<8x9xf32> to vector<8x1xf32>
    %478 = vector.shape_cast %477 : vector<8x1xf32> to vector<1x8x1xf32>
    %479 = vector.extract_strided_slice %420 {offsets = [0, 8, 0], sizes = [2, 1, 32], strides = [1, 1, 1]} : vector<2x9x32xf32> to vector<2x1x32xf32>
    %480 = vector.broadcast %478 : vector<1x8x1xf32> to vector<2x8x32xf32>
    %481 = vector.broadcast %479 : vector<2x1x32xf32> to vector<2x8x32xf32>
    %482 = arith.mulf %480, %481 : vector<2x8x32xf32>
    %483 = arith.addf %476, %482 : vector<2x8x32xf32>
    %c0_64 = arith.constant 0 : index
    %c48 = arith.constant 48 : index
    %484 = vector.load %arg1[%c0_64, %c48] : memref<9x50xf32, #tpu.memory_space<vmem>>, vector<8x1xf32>
    %c0_65 = arith.constant 0 : index
    %c49 = arith.constant 49 : index
    %485 = vector.load %arg1[%c0_65, %c49] : memref<9x50xf32, #tpu.memory_space<vmem>>, vector<8x1xf32>
    %cst_66 = arith.constant dense<0.000000e+00> : vector<2x8xf32>
    %486 = vector.multi_reduction <add>, %483, %cst_66 [2] : vector<2x8x32xf32> to vector<2x8xf32>
    %487 = vector.shape_cast %486 : vector<2x8xf32> to vector<2x8x1xf32>
    %488 = vector.extract_strided_slice %487 {offsets = [0, 0, 0], sizes = [1, 8, 1], strides = [1, 1, 1]} : vector<2x8x1xf32> to vector<1x8x1xf32>
    %489 = vector.extract_strided_slice %487 {offsets = [1, 0, 0], sizes = [1, 8, 1], strides = [1, 1, 1]} : vector<2x8x1xf32> to vector<1x8x1xf32>
    %490 = arith.addf %488, %489 : vector<1x8x1xf32>
    %cst_67 = arith.constant 1.562500e-02 : f32
    %491 = vector.broadcast %cst_67 : f32 to vector<1x8x1xf32>
    %492 = arith.mulf %490, %491 : vector<1x8x1xf32>
    %493 = vector.broadcast %492 : vector<1x8x1xf32> to vector<2x8x32xf32>
    %494 = arith.subf %483, %493 : vector<2x8x32xf32>
    %495 = arith.mulf %494, %494 : vector<2x8x32xf32>
    %cst_68 = arith.constant dense<0.000000e+00> : vector<2x8xf32>
    %496 = vector.multi_reduction <add>, %495, %cst_68 [2] : vector<2x8x32xf32> to vector<2x8xf32>
    %497 = vector.shape_cast %496 : vector<2x8xf32> to vector<2x8x1xf32>
    %498 = vector.extract_strided_slice %497 {offsets = [0, 0, 0], sizes = [1, 8, 1], strides = [1, 1, 1]} : vector<2x8x1xf32> to vector<1x8x1xf32>
    %499 = vector.extract_strided_slice %497 {offsets = [1, 0, 0], sizes = [1, 8, 1], strides = [1, 1, 1]} : vector<2x8x1xf32> to vector<1x8x1xf32>
    %500 = arith.addf %498, %499 : vector<1x8x1xf32>
    %cst_69 = arith.constant 1.562500e-02 : f32
    %501 = vector.broadcast %cst_69 : f32 to vector<1x8x1xf32>
    %502 = arith.mulf %500, %501 : vector<1x8x1xf32>
    %503 = vector.shape_cast %484 : vector<8x1xf32> to vector<1x8x1xf32>
    %cst_70 = arith.constant 9.99999974E-6 : f32
    %504 = vector.broadcast %cst_70 : f32 to vector<1x8x1xf32>
    %505 = arith.addf %502, %504 : vector<1x8x1xf32>
    %506 = math.rsqrt %505 : vector<1x8x1xf32>
    %507 = arith.mulf %503, %506 : vector<1x8x1xf32>
    %508 = vector.broadcast %507 : vector<1x8x1xf32> to vector<2x8x32xf32>
    %509 = arith.mulf %494, %508 : vector<2x8x32xf32>
    %510 = vector.shape_cast %485 : vector<8x1xf32> to vector<1x8x1xf32>
    %511 = vector.broadcast %510 : vector<1x8x1xf32> to vector<2x8x32xf32>
    %512 = arith.addf %509, %511 : vector<2x8x32xf32>
    %513 = arith.negf %512 : vector<2x8x32xf32>
    %514 = math.exp %513 : vector<2x8x32xf32>
    %cst_71 = arith.constant 1.000000e+00 : f32
    %515 = vector.broadcast %cst_71 : f32 to vector<2x8x32xf32>
    %516 = arith.addf %515, %514 : vector<2x8x32xf32>
    %517 = arith.divf %515, %516 : vector<2x8x32xf32>
    %518 = arith.mulf %512, %517 : vector<2x8x32xf32>
    %519 = arith.addf %518, %274 : vector<2x8x32xf32>
    %520 = arith.negf %519 : vector<2x8x32xf32>
    %521 = math.exp %520 : vector<2x8x32xf32>
    %cst_72 = arith.constant 1.000000e+00 : f32
    %522 = vector.broadcast %cst_72 : f32 to vector<2x8x32xf32>
    %523 = arith.addf %522, %521 : vector<2x8x32xf32>
    %524 = arith.divf %522, %523 : vector<2x8x32xf32>
    %525 = arith.mulf %519, %524 : vector<2x8x32xf32>
    %c0_73 = arith.constant 0 : index
    %c0_74 = arith.constant 0 : index
    %c0_75 = arith.constant 0 : index
    %526 = vector.load %arg2[%c0_73, %c0_74, %c0_75] : memref<2x8x32xf32, #tpu.memory_space<vmem>>, vector<2x8x32xf32>
    tpu.vector_store %arg2[%c0_73, %c0_74, %c0_75], %525 {strides = array<i32>} : memref<2x8x32xf32, #tpu.memory_space<vmem>>, vector<2x8x32xf32>,
    return
  }
}

</mosaic_0001>

<bundles_post_ra>
// kernel: _lambda_.1
= control target key start
LH: loop header
LB: loop body
LE: loop exit
PB: predicated region body
PF: predicated region fallthrough
CT: control target
= control target key end

     0   :  { %7 = vsyncpa [#allocation3], 0  ;;  %s2195_s0 = inlined_call_operand.vmem [shape: f32[2,1,68], index: 0, kind: input, shape index: {}]   ;;  %s2196_s1 = inlined_call_operand.hbm [shape: f32[9,50], index: 1, kind: input, shape index: {}]   ;;  %s2197_s2 = inlined_call_operand.hbm [shape: f32[2,8,32], index: 2, kind: output, shape index: {}]  }
   0x1   :  { %8 = vsyncpa [#allocation4], 0  ;;  %s15_s11 = sshll.u32 %s2196_s1, 4  ;;  %s1802_s12 = smov [#allocation2]   ;;  %s16_s11 = int_to_ptr.hbm [resolvable:$true] %s15_s11 }
   0x2   :  { %s17_s13 = sshll.u32 %s1802_s12, 4  ;;  %s1803_s14 = smov 128   ;;  %s18_s13 = int_to_ptr.vmem [resolvable:$true] %s17_s13 }
   0x3   :  { %s1804_s15 = smov 8  }
   0x4   :  { %23 = dma.hbm_to_vmem [thread:$0]  %s16_s11, 256, %s18_s13, [#allocation3], %s1803_s14, %s1803_s14, %s1804_s15  }
   0x5   :  { %1798 = dma.done.wait [#allocation3], 256  }
   0x6   :  { %1799 = vsyncadd [#allocation3], 4294967040  ;;  %v1805_v0 = vmov 1   ;;  %v1806_v1 = vmov 3   ;;  %v1807_v2 = vmov 0   ;;  %v1808_v4 = vmov 2  }
   0x7   :  { %1586 = vset.pattern.permute.xlu0 %v1805_v0  ;;  %1588 = vset.pattern.permute.xlu1 %v1806_v1  ;;  %v1885_v3 = vld [vmem:[#allocation2] sm:$0xf]  ;;  %v1809_v5 = vmov 4   ;;  %s1810_s19 = smov 127   ;;  %s1811_s20 = smov 125   ;;  %vm108_vm0 = vcmask 519168  }
   0x8   :  { %1590 = vset.pattern.permute.xlu2 %v1807_v2  ;;  %45 = vperm.xlu0 %1586, %v1885_v3   ;;  %v1649_v6 = vld [vmem:[%s2195_s0] ss:$0 sm:$0xff]  ;;  %v1650_v7 = vld [vmem:[%s2195_s0 + $0x1] ss:$0 sm:$0xff]  ;;  %s1812_s21 = smov 126   ;;  %s1813_s0 = smov 124  }
   0x9   :  { %77 = vperm.xlu1 %1588, %v1885_v3   ;;  %33 = vperm.xlu2 %1590, %v1885_v3   ;;  %v1814_v51 = vmov 6   ;;  %v1815_v52 = vmov 5   ;;  %v1816_v2 = vmov 7   ;;  %s1820_s22 = smov 2   ;;  %vm202_vm12 = vcmask 15360   ;;  %s1843_s23 = smov 4  }
   0xa   :  { %vm205_vm13 = vcmask 539648   ;;  %vm246_vm14 = vcmask 551936   ;;  %s1849_s24 = smov 120   ;;  %s1863_s25 = smov [#allocation5]  }
   0xb   :  { %s1471_s26 = sshll.u32 %s1863_s25, 4  ;;  %s1473_s29 = sshll.u32 %s2197_s2, 4  ;;  %s1472_s26 = int_to_ptr.vmem [resolvable:$true] %s1471_s26  ;;  %s1474_s29 = int_to_ptr.hbm [resolvable:$true] %s1473_s29 }
  0x10   :  { %1587 = vset.pattern.permute.xlu0 %v1808_v4  ;;  %v1817_v4 = vmov 8  }
  0x11   :  { %1589 = vset.pattern.permute.xlu1 %v1809_v5  ;;  %61 = vperm.xlu0 %1587, %v1885_v3  }
  0x12   :  { %93 = vperm.xlu1 %1589, %v1885_v3   ;;  %1591 = vset.pattern.permute.xlu2 %v1815_v52 }
  0x19   :  { %1592 = vset.pattern.permute.xlu0 %v1814_v51 }
  0x1a   :  { %1593 = vset.pattern.permute.xlu1 %v1816_v2 }
  0x63   :  { %v34_v20 = vpop.permute.xlu2 %33 }
  0x64   :  { %v43_v24 = vmul.f32 %v1650_v7, %v34_v20  ;;  %v42_v25 = vmul.f32 %v1649_v6, %v34_v20 }
  0x7a   :  { %v46_v8 = vpop.permute.xlu0 %45 }
  0x7b   :  { %v48_v9 = vmul.f32 %v1649_v6, %v46_v8  ;;  %v49_v10 = vmul.f32 %v1650_v7, %v46_v8  ;;  %v78_v11 = vpop.permute.xlu1 %77 }
  0x7c   :  { %v80_v12 = vmul.f32 %v1649_v6, %v78_v11  ;;  %v81_v19 = vmul.f32 %v1650_v7, %v78_v11 }
  0x7d   :  { %54 = vrot.lane.b32.xlu1 %v49_v10, %s1810_s19  ;;  %52 = vrot.lane.b32.xlu2 %v48_v9, %s1810_s19 }
  0x83   :  { %v62_v13 = vpop.permute.xlu0 %61 }
  0x84   :  { %v64_v14 = vmul.f32 %v1649_v6, %v62_v13  ;;  %v65_v15 = vmul.f32 %v1650_v7, %v62_v13  ;;  %v94_v16 = vpop.permute.xlu1 %93  ;;  %v1818_v13 = vmov 9  }
  0x85   :  { %84 = vrot.lane.b32.xlu1 %v80_v12, %s1811_s20  ;;  %v97_v17 = vmul.f32 %v1650_v7, %v94_v16  ;;  %v96_v18 = vmul.f32 %v1649_v6, %v94_v16 }
  0x86   :  { %70 = vrot.lane.b32.xlu0 %v65_v15, %s1812_s21  ;;  %68 = vrot.lane.b32.xlu2 %v64_v14, %s1812_s21  ;;  %v1819_v14 = vmov 10  }
  0x8d   :  { %102 = vrot.lane.b32.xlu1 %v97_v17, %s1813_s0 }
  0x8e   :  { %100 = vrot.lane.b32.xlu0 %v96_v18, %s1813_s0  ;;  %86 = vrot.lane.b32.xlu2 %v81_v19, %s1811_s20 }
  0xd7   :  { %v53_v21 = vpop.permute.xlu2 %52 }
  0xd8   :  { %v58_v30 = vadd.f32 %v53_v21, %v42_v25 }
  0xe0   :  { %v69_v23 = vpop.permute.xlu2 %68 }
  0xe1   :  { %v74_v31 = vadd.f32 %v69_v23, %v58_v30 }
  0xe8   :  { %v87_v32 = vpop.permute.xlu2 %86 }
  0xef   :  { %v55_v22 = vpop.permute.xlu1 %54 }
  0xf0   :  { %v59_v27 = vadd.f32 %v55_v22, %v43_v24 }
  0xf7   :  { %v85_v26 = vpop.permute.xlu1 %84 }
  0xf8   :  { %v71_v28 = vpop.permute.xlu0 %70  ;;  %v90_v34 = vadd.f32 %v85_v26, %v74_v31 }
  0xf9   :  { %v75_v29 = vadd.f32 %v71_v28, %v59_v27 }
  0xfb   :  { %v91_v33 = vadd.f32 %v87_v32, %v75_v29 }
  0xff   :  { %v103_v35 = vpop.permute.xlu1 %102 }
 0x100   :  { %v107_v36 = vadd.f32 %v103_v35, %v91_v33  ;;  %v101_v37 = vpop.permute.xlu0 %100 }
 0x101   :  { %v106_v38 = vadd.f32 %v101_v37, %v90_v34 }
 0x102   :  { %v112_v39 = vsel %vm108_vm0, %v107_v36, 0.0 }
 0x103   :  { %113 = vadd.xlane.f32.xlu0 %v112_v39  ;;  %v109_v40 = vsel %vm108_vm0, %v106_v38, 0.0 }
 0x104   :  { %110 = vadd.xlane.f32.xlu2 %v109_v40 }
 0x117   :  { %149 = vperm.xlu0 %1592, %v1885_v3  }
 0x176   :  { %v114_v41 = vpop.xlane.xlu0 %113 }
 0x177   :  { %v111_v42 = vpop.xlane.xlu2 %110 }
 0x178   :  { %v115_v43 = vadd.f32 %v114_v41, %v111_v42 }
 0x17a   :  { %v116_v44 = vmul.f32 0.0078125, %v115_v43 }
 0x17c   :  { %v117_v45 = vsub.f32 %v106_v38, %v116_v44  ;;  %v118_v46 = vsub.f32 %v107_v36, %v116_v44 }
 0x17e   :  { %v120_v47 = vmul.f32 %v118_v46, %v118_v46  ;;  %v119_v48 = vmul.f32 %v117_v45, %v117_v45 }
 0x180   :  { %v124_v49 = vsel %vm108_vm0, %v120_v47, 0.0  ;;  %v121_v50 = vsel %vm108_vm0, %v119_v48, 0.0 }
 0x181   :  { %125 = vadd.xlane.f32.xlu2 %v124_v49  ;;  %122 = vadd.xlane.f32.xlu1 %v121_v50 }
 0x189   :  { %v150_v6 = vpop.permute.xlu0 %149 }
 0x19a   :  { %209 = vperm.xlu1 %1593, %v1885_v3  }
 0x1a2   :  { %1595 = vset.pattern.permute.xlu1 %v1818_v13 }
 0x1f4   :  { %v126_v53 = vpop.xlane.xlu2 %125  ;;  %v123_v54 = vpop.xlane.xlu1 %122 }
 0x1f5   :  { %v127_v55 = vadd.f32 %v126_v53, %v123_v54 }
 0x1f7   :  { %v128_v56 = vmul.f32 0.0078125, %v127_v55 }
 0x1f9   :  { %v129_v57 = vadd.f32 1e-05, %v128_v56 }
 0x1fb   :  { %1651 = vrsqrt.f32 %v129_v57  ;;  %vm136_vm2 = vweird.f32 %v129_v57 }
 0x201   :  { %v1652_v58 = vpop.eup %1651 }
 0x202   :  { %v131_v59 = vmul.f32 %v1652_v58, %v129_v57  ;;  %vm137_vm1 = vweird.f32 %v1652_v58 }
 0x203   :  { %vm138_vm3 = vmor %vm136_vm2, %vm137_vm1 }
 0x204   :  { %v132_v60 = vmul.f32 %v1652_v58, %v131_v59 }
 0x206   :  { %v133_v61 = vmul.f32 0.5, %v132_v60 }
 0x208   :  { %v134_v62 = vsub.f32 1.5, %v133_v61 }
 0x20a   :  { %v135_v63 = vmul.f32 %v1652_v58, %v134_v62 }
 0x20c   :  { %v139_v0 = vsel %vm138_vm3, %v1652_v58, %v135_v63  ;;  %v210_v43 = vpop.permute.xlu1 %209 }
 0x20d   :  { %v140_v1 = vmul.f32 %v139_v0, %v1885_v3 }
 0x20f   :  { %143 = vperm.xlu2 %1591, %v140_v1  }
 0x217   :  { %1594 = vset.pattern.permute.xlu2 %v1817_v4 }
 0x218   :  { %217 = vperm.xlu2 %1594, %v1885_v3  }
 0x220   :  { %1596 = vset.pattern.permute.xlu2 %v1819_v14 }
 0x269   :  { %v144_v5 = vpop.permute.xlu2 %143 }
 0x26a   :  { %v146_v7 = vmul.f32 %v144_v5, %v117_v45  ;;  %v147_v8 = vmul.f32 %v144_v5, %v118_v46 }
 0x26c   :  { %v152_v9 = vadd.f32 %v150_v6, %v146_v7  ;;  %v153_v10 = vadd.f32 %v150_v6, %v147_v8 }
 0x26e   :  { %v1486_v11 = vmul.f32 -1.442695, %v152_v9  ;;  %v1487_v12 = vmul.f32 -1.442695, %v153_v10 }
 0x270   :  { %1653 = vpow2.f32 %v1486_v11 }
 0x271   :  { %1655 = vpow2.f32 %v1487_v12 }
 0x272   :  { %v218_v41 = vpop.permute.xlu2 %217 }
 0x276   :  { %v1654_v15 = vpop.eup %1653 }
 0x277   :  { %v1656_v16 = vpop.eup %1655  ;;  %v160_v17 = vadd.f32 1.0, %v1654_v15 }
 0x278   :  { %v161_v18 = vadd.f32 1.0, %v1656_v16 }
 0x279   :  { %1657 = vrcp.f32 %v160_v17  ;;  %v173_v24 = vand.u32 2147483648, %v160_v17  ;;  %v171_v27 = vand.u32 2147483647, %v160_v17  ;;  %vm167_vm6 = vweird.f32 %v160_v17 }
 0x27a   :  { %1659 = vrcp.f32 %v161_v18  ;;  %v188_v28 = vand.u32 2147483648, %v161_v18  ;;  %v186_v30 = vand.u32 2147483647, %v161_v18  ;;  %vm182_vm8 = vweird.f32 %v161_v18 }
 0x27b   :  { %v174_v32 = vor.u32 1.1754944e-38, %v173_v24  ;;  %vm172_vm9 = vcmp.eq.f32.partialorder %v171_v27, 8.507059e+37  ;;  %v1823_v24 = vmov 14  }
 0x27c   :  { %v189_v35 = vor.u32 1.1754944e-38, %v188_v28  ;;  %vm187_vm11 = vcmp.eq.f32.partialorder %v186_v30, 8.507059e+37  ;;  %1599 = vset.pattern.permute.xlu0 %v1823_v24  ;;  %v1824_v30 = vmov 13  }
 0x27f   :  { %v1658_v19 = vpop.eup %1657 }
 0x280   :  { %v1660_v20 = vpop.eup %1659  ;;  %v163_v21 = vmul.f32 %v1658_v19, %v160_v17  ;;  %vm168_vm4 = vweird.f32 %v1658_v19 }
 0x281   :  { %v178_v22 = vmul.f32 %v1660_v20, %v161_v18  ;;  %vm183_vm5 = vweird.f32 %v1660_v20  ;;  %vm169_vm7 = vmor %vm167_vm6, %vm168_vm4 }
 0x282   :  { %v164_v23 = vsub.f32 1.0, %v163_v21  ;;  %vm184_vm10 = vmor %vm182_vm8, %vm183_vm5 }
 0x283   :  { %v179_v25 = vsub.f32 1.0, %v178_v22  ;;  %v1821_v22 = vmov 11  }
 0x284   :  { %v165_v26 = vmul.f32 %v1658_v19, %v164_v23  ;;  %v1822_v23 = vmov 12  }
 0x285   :  { %v180_v29 = vmul.f32 %v1660_v20, %v179_v25 }
 0x286   :  { %v166_v31 = vadd.f32 %v1658_v19, %v165_v26 }
 0x287   :  { %v181_v33 = vadd.f32 %v1660_v20, %v180_v29 }
 0x288   :  { %v170_v34 = vsel %vm169_vm7, %v1658_v19, %v166_v31 }
 0x289   :  { %v175_v36 = vsel %vm172_vm9, %v174_v32, %v170_v34  ;;  %v185_v37 = vsel %vm184_vm10, %v1660_v20, %v181_v33 }
 0x28a   :  { %v190_v38 = vsel %vm187_vm11, %v189_v35, %v185_v37  ;;  %v192_v39 = vmul.f32 %v175_v36, %v152_v9 }
 0x28b   :  { %v193_v40 = vmul.f32 %v190_v38, %v153_v10 }
 0x28c   :  { %196 = vrot.lane.b32.xlu1 %v192_v39, %s1820_s22  ;;  %v1825_v39 = vmov 15  }
 0x28d   :  { %198 = vrot.lane.b32.xlu2 %v193_v40, %s1820_s22 }
 0x294   :  { %227 = vperm.xlu1 %1595, %v1885_v3  }
 0x295   :  { %237 = vperm.xlu2 %1596, %v1885_v3  }
 0x29c   :  { %1597 = vset.pattern.permute.xlu1 %v1821_v22 }
 0x29d   :  { %1598 = vset.pattern.permute.xlu2 %v1822_v23 }
 0x2e7   :  { %v199_v42 = vpop.permute.xlu2 %198 }
 0x2e8   :  { %v204_v44 = vsel %vm202_vm12, 0.0, %v199_v42 }
 0x2e9   :  { %v207_v45 = vsel %vm205_vm13, %v204_v44, 0.0 }
 0x2ea   :  { %v221_v47 = vperm.slane %v207_v45, 1  ;;  %v213_v48 = vperm.slane %v207_v45, 0  ;;  %v231_v59 = vperm.slane %v207_v45, 2  ;;  %v241_v60 = vperm.slane %v207_v45, 3 }
 0x2ec   :  { %v223_v53 = vmul.f32 %v221_v47, %v218_v41  ;;  %v215_v54 = vmul.f32 %v213_v48, %v210_v43 }
 0x2ee   :  { %v225_v63 = vadd.f32 %v223_v53, %v215_v54 }
 0x2ef   :  { %v238_v61 = vpop.permute.xlu2 %237 }
 0x2f0   :  { %v243_v4 = vmul.f32 %v241_v60, %v238_v61 }
 0x2fe   :  { %v197_v46 = vpop.permute.xlu1 %196 }
 0x2ff   :  { %v203_v49 = vsel %vm202_vm12, 0.0, %v197_v46 }
 0x300   :  { %v206_v50 = vsel %vm205_vm13, %v203_v49, 0.0 }
 0x301   :  { %v212_v51 = vperm.slane %v206_v50, 0  ;;  %v220_v52 = vperm.slane %v206_v50, 1  ;;  %v240_v57 = vperm.slane %v206_v50, 3  ;;  %v230_v58 = vperm.slane %v206_v50, 2 }
 0x303   :  { %v214_v55 = vmul.f32 %v212_v51, %v210_v43  ;;  %v222_v56 = vmul.f32 %v220_v52, %v218_v41  ;;  %v242_v7 = vmul.f32 %v240_v57, %v238_v61 }
 0x305   :  { %v224_v0 = vadd.f32 %v222_v56, %v214_v55 }
 0x306   :  { %v228_v62 = vpop.permute.xlu1 %227 }
 0x307   :  { %v232_v1 = vmul.f32 %v230_v58, %v228_v62  ;;  %v233_v2 = vmul.f32 %v231_v59, %v228_v62 }
 0x309   :  { %v234_v5 = vadd.f32 %v232_v1, %v224_v0  ;;  %v235_v6 = vadd.f32 %v233_v2, %v225_v63 }
 0x30b   :  { %v245_v8 = vadd.f32 %v243_v4, %v235_v6  ;;  %v244_v9 = vadd.f32 %v242_v7, %v234_v5 }
 0x30d   :  { %v250_v10 = vsel %vm246_vm14, %v245_v8, 0.0  ;;  %v247_v11 = vsel %vm246_vm14, %v244_v9, 0.0 }
 0x30e   :  { %251 = vadd.xlane.f32.xlu1 %v250_v10  ;;  %248 = vadd.xlane.f32.xlu0 %v247_v11 }
 0x381   :  { %v252_v12 = vpop.xlane.xlu1 %251  ;;  %v249_v13 = vpop.xlane.xlu0 %248 }
 0x382   :  { %v253_v14 = vadd.f32 %v252_v12, %v249_v13 }
 0x384   :  { %v254_v15 = vmul.f32 0.007352941, %v253_v14 }
 0x386   :  { %v255_v16 = vsub.f32 %v244_v9, %v254_v15  ;;  %v256_v17 = vsub.f32 %v245_v8, %v254_v15 }
 0x388   :  { %v258_v18 = vmul.f32 %v256_v17, %v256_v17  ;;  %v257_v19 = vmul.f32 %v255_v16, %v255_v16 }
 0x38a   :  { %v262_v20 = vsel %vm246_vm14, %v258_v18, 0.0  ;;  %v259_v21 = vsel %vm246_vm14, %v257_v19, 0.0 }
 0x38b   :  { %263 = vadd.xlane.f32.xlu0 %v262_v20  ;;  %260 = vadd.xlane.f32.xlu2 %v259_v21 }
 0x39f   :  { %339 = vperm.xlu0 %1599, %v1885_v3  }
 0x3a3   :  { %287 = vperm.xlu2 %1598, %v1885_v3  }
 0x3ab   :  { %1601 = vset.pattern.permute.xlu2 %v1824_v30 }
 0x3ac   :  { %333 = vperm.xlu2 %1601, %v1885_v3  }
 0x3fe   :  { %v264_v25 = vpop.xlane.xlu0 %263  ;;  %v261_v26 = vpop.xlane.xlu2 %260 }
 0x3ff   :  { %v265_v27 = vadd.f32 %v264_v25, %v261_v26 }
 0x401   :  { %v266_v28 = vmul.f32 0.007352941, %v265_v27 }
 0x403   :  { %v267_v29 = vadd.f32 1e-05, %v266_v28 }
 0x405   :  { %1661 = vrsqrt.f32 %v267_v29  ;;  %vm274_vm1 = vweird.f32 %v267_v29 }
 0x406   :  { %v288_v41 = vpop.permute.xlu2 %287 }
 0x40b   :  { %v1662_v31 = vpop.eup %1661 }
 0x40c   :  { %v269_v32 = vmul.f32 %v1662_v31, %v267_v29  ;;  %vm275_vm15 = vweird.f32 %v1662_v31 }
 0x40d   :  { %vm276_vm2 = vmor %vm274_vm1, %vm275_vm15 }
 0x40e   :  { %v270_v33 = vmul.f32 %v1662_v31, %v269_v32 }
 0x410   :  { %v271_v34 = vmul.f32 0.5, %v270_v33 }
 0x411   :  { %v340_v8 = vpop.permute.xlu0 %339 }
 0x412   :  { %v272_v35 = vsub.f32 1.5, %v271_v34 }
 0x414   :  { %v273_v36 = vmul.f32 %v1662_v31, %v272_v35 }
 0x416   :  { %v277_v37 = vsel %vm276_vm2, %v1662_v31, %v273_v36 }
 0x417   :  { %v278_v38 = vmul.f32 %v277_v37, %v1885_v3 }
 0x419   :  { %281 = vperm.xlu1 %1597, %v278_v38  }
 0x421   :  { %1600 = vset.pattern.permute.xlu1 %v1825_v39 }
 0x422   :  { %355 = vperm.xlu1 %1600, %v1885_v3  }
 0x48b   :  { %v282_v40 = vpop.permute.xlu1 %281 }
 0x48c   :  { %v284_v42 = vmul.f32 %v282_v40, %v255_v16  ;;  %v285_v43 = vmul.f32 %v282_v40, %v256_v17  ;;  %v334_v17 = vpop.permute.xlu2 %333  ;;  %v1826_v40 = vmov 16  }
 0x48d   :  { %1602 = vset.pattern.permute.xlu1 %v1826_v40 }
 0x48e   :  { %v290_v44 = vadd.f32 %v288_v41, %v284_v42  ;;  %v291_v45 = vadd.f32 %v288_v41, %v285_v43  ;;  %v1827_v41 = vmov 17  }
 0x48f   :  { %1603 = vset.pattern.permute.xlu2 %v1827_v41 }
 0x490   :  { %v1488_v46 = vmul.f32 -1.442695, %v290_v44  ;;  %v1489_v47 = vmul.f32 -1.442695, %v291_v45 }
 0x492   :  { %1663 = vpow2.f32 %v1488_v46 }
 0x493   :  { %1665 = vpow2.f32 %v1489_v47  ;;  %v1930_v47 = vld [vmem:[#allocation2] sm:$0xff] }
 0x494   :  { %v356_v14 = vpop.permute.xlu1 %355 }
 0x498   :  { %v1664_v48 = vpop.eup %1663 }
 0x499   :  { %v1666_v49 = vpop.eup %1665  ;;  %v298_v50 = vadd.f32 1.0, %v1664_v48  ;;  %v1828_v48 = vmov 18  }
 0x49a   :  { %v299_v51 = vadd.f32 1.0, %v1666_v49  ;;  %1604 = vset.pattern.permute.xlu0 %v1828_v48 }
 0x49b   :  { %1667 = vrcp.f32 %v298_v50  ;;  %v311_v57 = vand.u32 2147483648, %v298_v50  ;;  %v309_v60 = vand.u32 2147483647, %v298_v50  ;;  %vm305_vm5 = vweird.f32 %v298_v50 }
 0x49c   :  { %1669 = vrcp.f32 %v299_v51  ;;  %v326_v61 = vand.u32 2147483648, %v299_v51  ;;  %v324_v63 = vand.u32 2147483647, %v299_v51  ;;  %vm320_vm7 = vweird.f32 %v299_v51 }
 0x49d   :  { %v312_v1 = vor.u32 1.1754944e-38, %v311_v57  ;;  %vm310_vm8 = vcmp.eq.f32.partialorder %v309_v60, 8.507059e+37 }
 0x49e   :  { %v327_v5 = vor.u32 1.1754944e-38, %v326_v61  ;;  %vm325_vm10 = vcmp.eq.f32.partialorder %v324_v63, 8.507059e+37 }
 0x4a1   :  { %v1668_v52 = vpop.eup %1667 }
 0x4a2   :  { %v1670_v53 = vpop.eup %1669  ;;  %v301_v54 = vmul.f32 %v1668_v52, %v298_v50  ;;  %vm306_vm3 = vweird.f32 %v1668_v52 }
 0x4a3   :  { %v316_v55 = vmul.f32 %v1670_v53, %v299_v51  ;;  %vm321_vm4 = vweird.f32 %v1670_v53  ;;  %vm307_vm6 = vmor %vm305_vm5, %vm306_vm3  ;;  %v1829_v51 = vmov 20  }
 0x4a4   :  { %v302_v56 = vsub.f32 1.0, %v301_v54  ;;  %vm322_vm9 = vmor %vm320_vm7, %vm321_vm4 }
 0x4a5   :  { %v317_v58 = vsub.f32 1.0, %v316_v55 }
 0x4a6   :  { %v303_v59 = vmul.f32 %v1668_v52, %v302_v56 }
 0x4a7   :  { %v318_v62 = vmul.f32 %v1670_v53, %v317_v58  ;;  %v1830_v58 = vmov 19  }
 0x4a8   :  { %v304_v0 = vadd.f32 %v1668_v52, %v303_v59  ;;  %v1831_v59 = vmov 21  }
 0x4a9   :  { %v319_v2 = vadd.f32 %v1670_v53, %v318_v62 }
 0x4aa   :  { %v308_v4 = vsel %vm307_vm6, %v1668_v52, %v304_v0  ;;  %vm495_vm6 = vcmask 523264  }
 0x4ab   :  { %v313_v6 = vsel %vm310_vm8, %v312_v1, %v308_v4  ;;  %v323_v7 = vsel %vm322_vm9, %v1670_v53, %v319_v2 }
 0x4ac   :  { %v328_v9 = vsel %vm325_vm10, %v327_v5, %v323_v7  ;;  %v330_v10 = vmul.f32 %v313_v6, %v290_v44 }
 0x4ad   :  { %v331_v11 = vmul.f32 %v328_v9, %v291_v45 }
 0x4ae   :  { %v342_v12 = vmul.f32 %v340_v8, %v330_v10  ;;  %v358_v15 = vmul.f32 %v356_v14, %v330_v10  ;;  %v336_v25 = vmul.f32 %v334_v17, %v330_v10 }
 0x4af   :  { %v343_v13 = vmul.f32 %v340_v8, %v331_v11  ;;  %v359_v16 = vmul.f32 %v356_v14, %v331_v11  ;;  %v337_v19 = vmul.f32 %v334_v17, %v331_v11 }
 0x4b0   :  { %346 = vrot.lane.b32.xlu1 %v342_v12, %s1812_s21 }
 0x4b1   :  { %348 = vrot.lane.b32.xlu2 %v343_v13, %s1812_s21 }
 0x4b8   :  { %362 = vrot.lane.b32.xlu1 %v358_v15, %s1813_s0 }
 0x4b9   :  { %364 = vrot.lane.b32.xlu2 %v359_v16, %s1813_s0 }
 0x50b   :  { %v349_v18 = vpop.permute.xlu2 %348 }
 0x50c   :  { %v353_v20 = vadd.f32 %v349_v18, %v337_v19 }
 0x513   :  { %v365_v21 = vpop.permute.xlu2 %364 }
 0x514   :  { %v369_v22 = vadd.f32 %v365_v21, %v353_v20 }
 0x516   :  { %v373_v23 = vsel %vm108_vm0, %v369_v22, 0.0 }
 0x517   :  { %374 = vadd.xlane.f32.xlu1 %v373_v23 }
 0x522   :  { %v347_v24 = vpop.permute.xlu1 %346 }
 0x523   :  { %v352_v26 = vadd.f32 %v347_v24, %v336_v25 }
 0x52a   :  { %v363_v27 = vpop.permute.xlu1 %362 }
 0x52b   :  { %v368_v28 = vadd.f32 %v363_v27, %v352_v26 }
 0x52d   :  { %v370_v29 = vsel %vm108_vm0, %v368_v28, 0.0 }
 0x52e   :  { %371 = vadd.xlane.f32.xlu0 %v370_v29 }
 0x58a   :  { %v375_v30 = vpop.xlane.xlu1 %374 }
 0x5a1   :  { %v372_v31 = vpop.xlane.xlu0 %371 }
 0x5a2   :  { %v376_v32 = vadd.f32 %v375_v30, %v372_v31 }
 0x5a4   :  { %v377_v33 = vmul.f32 0.0078125, %v376_v32 }
 0x5a6   :  { %v378_v34 = vsub.f32 %v368_v28, %v377_v33  ;;  %v379_v35 = vsub.f32 %v369_v22, %v377_v33 }
 0x5a8   :  { %v381_v36 = vmul.f32 %v379_v35, %v379_v35  ;;  %v380_v37 = vmul.f32 %v378_v34, %v378_v34 }
 0x5aa   :  { %v385_v38 = vsel %vm108_vm0, %v381_v36, 0.0  ;;  %v382_v39 = vsel %vm108_vm0, %v380_v37, 0.0 }
 0x5ab   :  { %386 = vadd.xlane.f32.xlu0 %v385_v38  ;;  %383 = vadd.xlane.f32.xlu2 %v382_v39 }
 0x5bf   :  { %458 = vperm.xlu0 %1604, %v1930_v47  }
 0x5c3   :  { %410 = vperm.xlu2 %1603, %v1885_v3  }
 0x5cb   :  { %1606 = vset.pattern.permute.xlu2 %v1829_v51 }
 0x5cc   :  { %476 = vperm.xlu2 %1606, %v1930_v47  }
 0x61e   :  { %v387_v42 = vpop.xlane.xlu0 %386  ;;  %v384_v43 = vpop.xlane.xlu2 %383 }
 0x61f   :  { %v388_v44 = vadd.f32 %v387_v42, %v384_v43 }
 0x621   :  { %v389_v45 = vmul.f32 0.0078125, %v388_v44 }
 0x623   :  { %v390_v46 = vadd.f32 1e-05, %v389_v45 }
 0x625   :  { %1671 = vrsqrt.f32 %v390_v46  ;;  %vm397_vm11 = vweird.f32 %v390_v46 }
 0x626   :  { %v411_v61 = vpop.permute.xlu2 %410 }
 0x62b   :  { %v1672_v49 = vpop.eup %1671 }
 0x62c   :  { %v392_v50 = vmul.f32 %v1672_v49, %v390_v46  ;;  %vm398_vm0 = vweird.f32 %v1672_v49 }
 0x62d   :  { %vm399_vm12 = vmor %vm397_vm11, %vm398_vm0 }
 0x62e   :  { %v393_v52 = vmul.f32 %v1672_v49, %v392_v50  ;;  %v477_v38 = vpop.permute.xlu2 %476 }
 0x630   :  { %v394_v53 = vmul.f32 0.5, %v393_v52 }
 0x631   :  { %v459_v31 = vpop.permute.xlu0 %458 }
 0x632   :  { %v395_v54 = vsub.f32 1.5, %v394_v53 }
 0x634   :  { %v396_v55 = vmul.f32 %v1672_v49, %v395_v54 }
 0x636   :  { %v400_v56 = vsel %vm399_vm12, %v1672_v49, %v396_v55 }
 0x637   :  { %v401_v57 = vmul.f32 %v400_v56, %v1885_v3 }
 0x639   :  { %404 = vperm.xlu1 %1602, %v401_v57  }
 0x641   :  { %1605 = vset.pattern.permute.xlu1 %v1830_v58 }
 0x642   :  { %466 = vperm.xlu1 %1605, %v1930_v47  }
 0x64a   :  { %1607 = vset.pattern.permute.xlu1 %v1831_v59 }
 0x64b   :  { %486 = vperm.xlu1 %1607, %v1930_v47  }
 0x6ab   :  { %v405_v60 = vpop.permute.xlu1 %404 }
 0x6ac   :  { %v407_v62 = vmul.f32 %v405_v60, %v378_v34  ;;  %v408_v63 = vmul.f32 %v405_v60, %v379_v35 }
 0x6ae   :  { %v413_v0 = vadd.f32 %v411_v61, %v407_v62  ;;  %v414_v1 = vadd.f32 %v411_v61, %v408_v63 }
 0x6b0   :  { %v1490_v2 = vmul.f32 -1.442695, %v413_v0  ;;  %v1491_v4 = vmul.f32 -1.442695, %v414_v1 }
 0x6b2   :  { %1673 = vpow2.f32 %v1490_v2 }
 0x6b3   :  { %1675 = vpow2.f32 %v1491_v4 }
 0x6b4   :  { %v467_v20 = vpop.permute.xlu1 %466 }
 0x6b8   :  { %v1674_v3 = vpop.eup %1673 }
 0x6b9   :  { %v1676_v5 = vpop.eup %1675  ;;  %v421_v6 = vadd.f32 1.0, %v1674_v3 }
 0x6ba   :  { %v422_v7 = vadd.f32 1.0, %v1676_v5  ;;  %v1832_v5 = vmov 22  }
 0x6bb   :  { %1677 = vrcp.f32 %v421_v6  ;;  %v434_v13 = vand.u32 2147483648, %v421_v6  ;;  %v432_v16 = vand.u32 2147483647, %v421_v6  ;;  %vm428_vm15 = vweird.f32 %v421_v6  ;;  %1608 = vset.pattern.permute.xlu1 %v1832_v5 }
 0x6bc   :  { %1679 = vrcp.f32 %v422_v7  ;;  %v449_v17 = vand.u32 2147483648, %v422_v7  ;;  %v447_v19 = vand.u32 2147483647, %v422_v7  ;;  %vm443_vm2 = vweird.f32 %v422_v7 }
 0x6bd   :  { %v435_v22 = vor.u32 1.1754944e-38, %v434_v13  ;;  %vm433_vm3 = vcmp.eq.f32.partialorder %v432_v16, 8.507059e+37  ;;  %v487_v44 = vpop.permute.xlu1 %486 }
 0x6be   :  { %v450_v25 = vor.u32 1.1754944e-38, %v449_v17  ;;  %vm448_vm5 = vcmp.eq.f32.partialorder %v447_v19, 8.507059e+37 }
 0x6c1   :  { %v1678_v8 = vpop.eup %1677 }
 0x6c2   :  { %v1680_v9 = vpop.eup %1679  ;;  %v424_v10 = vmul.f32 %v1678_v8, %v421_v6  ;;  %vm429_vm13 = vweird.f32 %v1678_v8  ;;  %v1833_v6 = vmov 23  }
 0x6c3   :  { %v439_v11 = vmul.f32 %v1680_v9, %v422_v7  ;;  %vm444_vm14 = vweird.f32 %v1680_v9  ;;  %vm430_vm1 = vmor %vm428_vm15, %vm429_vm13  ;;  %1609 = vset.pattern.permute.xlu2 %v1833_v6 }
 0x6c4   :  { %v425_v12 = vsub.f32 1.0, %v424_v10  ;;  %vm445_vm4 = vmor %vm443_vm2, %vm444_vm14 }
 0x6c5   :  { %v440_v14 = vsub.f32 1.0, %v439_v11 }
 0x6c6   :  { %v426_v15 = vmul.f32 %v1678_v8, %v425_v12 }
 0x6c7   :  { %v441_v18 = vmul.f32 %v1680_v9, %v440_v14 }
 0x6c8   :  { %v427_v21 = vadd.f32 %v1678_v8, %v426_v15 }
 0x6c9   :  { %v442_v23 = vadd.f32 %v1680_v9, %v441_v18 }
 0x6ca   :  { %v431_v24 = vsel %vm430_vm1, %v1678_v8, %v427_v21 }
 0x6cb   :  { %v436_v26 = vsel %vm433_vm3, %v435_v22, %v431_v24  ;;  %v446_v27 = vsel %vm445_vm4, %v1680_v9, %v442_v23 }
 0x6cc   :  { %v451_v28 = vsel %vm448_vm5, %v450_v25, %v446_v27  ;;  %v453_v29 = vmul.f32 %v436_v26, %v413_v0  ;;  %v1834_v27 = vmov 0.5  }
 0x6cd   :  { %v454_v30 = vmul.f32 %v451_v28, %v414_v1 }
 0x6ce   :  { %v469_v32 = vperm.slane %v453_v29, 1  ;;  %v461_v33 = vperm.slane %v453_v29, 0  ;;  %v479_v34 = vperm.slane %v453_v29, 2  ;;  %v489_v41 = vperm.slane %v453_v29, 3 }
 0x6cf   :  { %v470_v35 = vperm.slane %v454_v30, 1  ;;  %v462_v36 = vperm.slane %v454_v30, 0  ;;  %v480_v37 = vperm.slane %v454_v30, 2  ;;  %v490_v45 = vperm.slane %v454_v30, 3 }
 0x6d0   :  { %v471_v39 = vmul.f32 %v469_v32, %v467_v20  ;;  %v463_v40 = vmul.f32 %v461_v33, %v459_v31  ;;  %v481_v48 = vmul.f32 %v479_v34, %v477_v38  ;;  %v491_v51 = vmul.f32 %v489_v41, %v487_v44 }
 0x6d1   :  { %v472_v42 = vmul.f32 %v470_v35, %v467_v20  ;;  %v464_v43 = vmul.f32 %v462_v36, %v459_v31  ;;  %v482_v50 = vmul.f32 %v480_v37, %v477_v38  ;;  %v492_v53 = vmul.f32 %v490_v45, %v487_v44 }
 0x6d2   :  { %v473_v46 = vadd.f32 %v471_v39, %v463_v40  ;;  %v581_v20 = vlaneseq  ;;  %v1835_v41 = vmov 24  }
 0x6d3   :  { %v474_v49 = vadd.f32 %v472_v42, %v464_v43  ;;  %v1836_v42 = vmov 25   ;;  %v1837_v43 = vmov 26  }
 0x6d4   :  { %v483_v52 = vadd.f32 %v481_v48, %v473_v46  ;;  %v591_v21 = vand.u32 127, %v581_v20  ;;  %v582_v22 = vshrl.u32 %v581_v20, 7  ;;  %1612 = vset.pattern.permute.xlu0 %v1837_v43  ;;  %v1838_v48 = vmov 27  }
 0x6d5   :  { %v484_v54 = vadd.f32 %v482_v50, %v474_v49  ;;  %v1839_v49 = vmov 28  }
 0x6d6   :  { %v493_v55 = vadd.f32 %v491_v51, %v483_v52  ;;  %v592_v23 = vmul.u32 2, %v591_v21  ;;  %v589_v24 = vadd.s32 56, %v582_v22  ;;  %v588_v26 = vadd.s32 48, %v582_v22 }
 0x6d7   :  { %v494_v56 = vadd.f32 %v492_v53, %v484_v54  ;;  %v587_v28 = vadd.s32 40, %v582_v22  ;;  %v586_v29 = vadd.s32 32, %v582_v22  ;;  %v585_v30 = vadd.s32 24, %v582_v22 }
 0x6d8   :  { %v496_v57 = vsel %vm495_vm6, %v493_v55, 0.0  ;;  %v601_v25 = vadd.s32 1, %v592_v23  ;;  %vm600_vm10 = vcmp.eq.s32.totalorder %v589_v24, %v592_v23  ;;  %vm599_vm12 = vcmp.eq.s32.totalorder %v588_v26, %v592_v23 }
 0x6d9   :  { %v499_v58 = vsel %vm495_vm6, %v494_v56, 0.0  ;;  %497 = vadd.xlane.f32.xlu2 %v496_v57  ;;  %vm598_vm15 = vcmp.eq.s32.totalorder %v587_v28, %v592_v23  ;;  %vm597_vm3 = vcmp.eq.s32.totalorder %v586_v29, %v592_v23  ;;  %v584_v31 = vadd.s32 16, %v582_v22 }
 0x6da   :  { %500 = vadd.xlane.f32.xlu1 %v499_v58  ;;  %vm609_vm0 = vcmp.eq.s32.totalorder %v589_v24, %v601_v25  ;;  %vm608_vm13 = vcmp.eq.s32.totalorder %v588_v26, %v601_v25  ;;  %vm607_vm1 = vcmp.eq.s32.totalorder %v587_v28, %v601_v25  ;;  %vm606_vm4 = vcmp.eq.s32.totalorder %v586_v29, %v601_v25 }
 0x6db   :  { %vm617_vm11 = vmor %vm600_vm10, %vm609_vm0  ;;  %vm595_vm10 = vcmp.eq.s32.totalorder %v584_v31, %v592_v23  ;;  %vm604_vm0 = vcmp.eq.s32.totalorder %v584_v31, %v601_v25  ;;  %v583_v32 = vadd.s32 8, %v582_v22  ;;  %v1840_v54 = vmov 29  }
 0x6dc   :  { %1494 = vmatpush.msk.msra.mxu0 %vm617_vm11, %v1834_v27  ;;  %1503 = vmatpush.msk.msra.mxu1 %vm617_vm11, %v1834_v27  ;;  %vm616_vm14 = vmor %vm599_vm12, %vm608_vm13 }
 0x6dd   :  { %vm615_vm2 = vmor %vm598_vm15, %vm607_vm1  ;;  %vm594_vm12 = vcmp.eq.s32.totalorder %v583_v32, %v592_v23  ;;  %vm603_vm13 = vcmp.eq.s32.totalorder %v583_v32, %v601_v25  ;;  %vm593_vm15 = vcmp.eq.s32.totalorder %v582_v22, %v592_v23  ;;  %vm602_vm1 = vcmp.eq.s32.totalorder %v582_v22, %v601_v25 }
 0x6de   :  { %1495 = vmatpush.msk.msra.mxu0 %vm616_vm14, %v1834_v27  ;;  %1504 = vmatpush.msk.msra.mxu1 %vm616_vm14, %v1834_v27  ;;  %vm614_vm5 = vmor %vm597_vm3, %vm606_vm4 }
 0x6df   :  { %vm612_vm11 = vmor %vm595_vm10, %vm604_vm0 }
 0x6e0   :  { %1496 = vmatpush.msk.msra.mxu0 %vm615_vm2, %v1834_v27  ;;  %1505 = vmatpush.msk.msra.mxu1 %vm615_vm2, %v1834_v27  ;;  %vm611_vm14 = vmor %vm594_vm12, %vm603_vm13  ;;  %vm830_vm12 = vcmask 326656   ;;  %vm834_vm13 = vcmask 319488  }
 0x6e1   :  { %vm610_vm2 = vmor %vm593_vm15, %vm602_vm1 }
 0x6e2   :  { %1497 = vmatpush.msk.msra.mxu0 %vm614_vm5, %v1834_v27  ;;  %1506 = vmatpush.msk.msra.mxu1 %vm614_vm5, %v1834_v27 }
 0x74c   :  { %v498_v59 = vpop.xlane.xlu2 %497 }
 0x74d   :  { %v501_v60 = vpop.xlane.xlu1 %500 }
 0x74e   :  { %v502_v61 = vadd.f32 %v501_v60, %v498_v59 }
 0x750   :  { %v503_v62 = vmul.f32 0.0078125, %v502_v61 }
 0x752   :  { %v1939_v63 = vsub.f32 %v493_v55, %v503_v62  ;;  %v1941_v0 = vsub.f32 %v494_v56, %v503_v62 }
 0x754   :  { %v507_v1 = vmul.f32 %v1941_v0, %v1941_v0  ;;  %v506_v2 = vmul.f32 %v1939_v63, %v1939_v63 }
 0x756   :  { %v511_v4 = vsel %vm495_vm6, %v507_v1, 0.0  ;;  %v508_v3 = vsel %vm495_vm6, %v506_v2, 0.0 }
 0x757   :  { %512 = vadd.xlane.f32.xlu2 %v511_v4  ;;  %509 = vadd.xlane.f32.xlu0 %v508_v3  ;;  %v1967_v4 = vld [vmem:[#allocation2 + $0x8] sm:$0x1] }
 0x76b   :  { %723 = vperm.xlu0 %1612, %v1930_v47  }
 0x76f   :  { %536 = vperm.xlu2 %1609, %v1930_v47  }
 0x777   :  { %1611 = vset.pattern.permute.xlu2 %v1836_v42 }
 0x778   :  { %705 = vperm.xlu2 %1611, %v1930_v47  }
 0x780   :  { %1614 = vset.pattern.permute.xlu2 %v1839_v49 }
 0x781   :  { %759 = vperm.xlu2 %1614, %v1930_v47  }
 0x7ca   :  { %v513_v7 = vpop.xlane.xlu2 %512  ;;  %v510_v8 = vpop.xlane.xlu0 %509 }
 0x7cb   :  { %v514_v9 = vadd.f32 %v513_v7, %v510_v8 }
 0x7cd   :  { %v515_v10 = vmul.f32 0.0078125, %v514_v9 }
 0x7cf   :  { %v516_v11 = vadd.f32 1e-05, %v515_v10 }
 0x7d1   :  { %1681 = vrsqrt.f32 %v516_v11  ;;  %vm523_vm8 = vweird.f32 %v516_v11 }
 0x7d2   :  { %v537_v34 = vpop.permute.xlu2 %536 }
 0x7d7   :  { %v1682_v12 = vpop.eup %1681 }
 0x7d8   :  { %v518_v13 = vmul.f32 %v1682_v12, %v516_v11  ;;  %vm524_vm7 = vweird.f32 %v1682_v12  ;;  %v1841_v11 = vmov 30  }
 0x7d9   :  { %vm525_vm9 = vmor %vm523_vm8, %vm524_vm7  ;;  %vm596_vm7 = vcmp.eq.s32.totalorder %v585_v30, %v592_v23  ;;  %vm605_vm8 = vcmp.eq.s32.totalorder %v585_v30, %v601_v25  ;;  %1616 = vset.pattern.permute.xlu2 %v1841_v11 }
 0x7da   :  { %v519_v14 = vmul.f32 %v1682_v12, %v518_v13  ;;  %795 = vperm.xlu2 %1616, %v1930_v47  }
 0x7dc   :  { %v520_v15 = vmul.f32 0.5, %v519_v14 }
 0x7dd   :  { %v724_v20 = vpop.permute.xlu0 %723 }
 0x7de   :  { %v521_v16 = vsub.f32 1.5, %v520_v15 }
 0x7e0   :  { %v522_v17 = vmul.f32 %v1682_v12, %v521_v16  ;;  %v706_v16 = vpop.permute.xlu2 %705 }
 0x7e2   :  { %v526_v18 = vsel %vm525_vm9, %v1682_v12, %v522_v17  ;;  %vm613_vm9 = vmor %vm596_vm7, %vm605_vm8  ;;  %v1842_v12 = vmov 31   ;;  %1619 = vset.pattern.permute.xlu2 %v1836_v42 }
 0x7e3   :  { %v527_v19 = vmul.f32 %v526_v18, %v1930_v47  ;;  %1498 = vmatpush.msk.msra.mxu0 %vm613_vm9, %v1834_v27  ;;  %1507 = vmatpush.msk.msra.mxu1 %vm613_vm9, %v1834_v27 }
 0x7e4   :  { %1617 = vset.pattern.permute.xlu0 %v1842_v12  ;;  %709 = vperm.xlu2 %1619, %v1967_v4  }
 0x7e5   :  { %530 = vperm.xlu1 %1608, %v527_v19   ;;  %1499 = vmatpush.msk.msra.mxu0 %vm612_vm11, %v1834_v27 }
 0x7e6   :  { %1508 = vmatpush.msk.msra.mxu1 %vm612_vm11, %v1834_v27  ;;  %vm683_vm11 = vcmask 293888  }
 0x7e7   :  { %1500 = vmatpush.msk.msra.mxu0 %vm611_vm14, %v1834_v27 }
 0x7e8   :  { %1509 = vmatpush.msk.msra.mxu1 %vm611_vm14, %v1834_v27  ;;  %v760_v18 = vpop.permute.xlu2 %759 }
 0x7e9   :  { %1501 = vmatpush.msk.msra.mxu0 %vm610_vm2, %v1834_v27 }
 0x7ea   :  { %1510 = vmatpush.msk.msra.mxu1 %vm610_vm2, %v1834_v27 }
 0x7ec   :  { %1621 = vset.pattern.permute.xlu2 %v1838_v48 }
 0x7ed   :  { %1610 = vset.pattern.permute.xlu1 %v1835_v41  ;;  %745 = vperm.xlu2 %1621, %v1967_v4  }
 0x7ee   :  { %690 = vperm.xlu1 %1610, %v1930_v47  }
 0x7f5   :  { %1624 = vset.pattern.permute.xlu2 %v1841_v11 }
 0x7f6   :  { %1613 = vset.pattern.permute.xlu1 %v1838_v48  ;;  %799 = vperm.xlu2 %1624, %v1967_v4  }
 0x7f7   :  { %741 = vperm.xlu1 %1613, %v1930_v47  }
 0x7ff   :  { %1615 = vset.pattern.permute.xlu1 %v1840_v54 }
 0x800   :  { %777 = vperm.xlu1 %1615, %v1930_v47  }
 0x808   :  { %1618 = vset.pattern.permute.xlu1 %v1835_v41 }
 0x809   :  { %695 = vperm.xlu1 %1618, %v1967_v4  }
 0x811   :  { %1620 = vset.pattern.permute.xlu1 %v1837_v43 }
 0x812   :  { %727 = vperm.xlu1 %1620, %v1967_v4  }
 0x81a   :  { %1623 = vset.pattern.permute.xlu1 %v1840_v54 }
 0x81b   :  { %781 = vperm.xlu1 %1623, %v1967_v4  }
 0x823   :  { %1625 = vset.pattern.permute.xlu1 %v1842_v12 }
 0x824   :  { %817 = vperm.xlu1 %1625, %v1967_v4  }
 0x834   :  { %v1993_v21 = vpop.permute.xlu2 %795 }
 0x83e   :  { %v710_v32 = vpop.permute.xlu2 %709 }
 0x857   :  { %v531_v33 = vpop.permute.xlu1 %530 }
 0x858   :  { %v533_v35 = vmul.f32 %v531_v33, %v1939_v63  ;;  %v534_v36 = vmul.f32 %v531_v33, %v1941_v0 }
 0x85a   :  { %v1953_v37 = vadd.f32 %v537_v34, %v533_v35  ;;  %v1955_v38 = vadd.f32 %v537_v34, %v534_v36 }
 0x85c   :  { %v1492_v39 = vmul.f32 -1.442695, %v1953_v37  ;;  %v1493_v40 = vmul.f32 -1.442695, %v1955_v38 }
 0x85e   :  { %1683 = vpow2.f32 %v1492_v39 }
 0x85f   :  { %1685 = vpow2.f32 %v1493_v40 }
 0x860   :  { %v691_v15 = vpop.permute.xlu1 %690 }
 0x864   :  { %v1684_v44 = vpop.eup %1683 }
 0x865   :  { %v1686_v45 = vpop.eup %1685  ;;  %v547_v46 = vadd.f32 1.0, %v1684_v44 }
 0x866   :  { %v548_v50 = vadd.f32 1.0, %v1686_v45 }
 0x867   :  { %1687 = vrcp.f32 %v547_v46  ;;  %v560_v57 = vand.u32 2147483648, %v547_v46  ;;  %v558_v60 = vand.u32 2147483647, %v547_v46  ;;  %vm554_vm5 = vweird.f32 %v547_v46 }
 0x868   :  { %1689 = vrcp.f32 %v548_v50  ;;  %v575_v61 = vand.u32 2147483648, %v548_v50  ;;  %v573_v63 = vand.u32 2147483647, %v548_v50  ;;  %vm569_vm8 = vweird.f32 %v548_v50 }
 0x869   :  { %v561_v1 = vor.u32 1.1754944e-38, %v560_v57  ;;  %vm559_vm9 = vcmp.eq.f32.partialorder %v558_v60, 8.507059e+37  ;;  %v742_v17 = vpop.permute.xlu1 %741 }
 0x86a   :  { %v576_v5 = vor.u32 1.1754944e-38, %v575_v61  ;;  %vm574_vm0 = vcmp.eq.f32.partialorder %v573_v63, 8.507059e+37 }
 0x86d   :  { %v1688_v51 = vpop.eup %1687 }
 0x86e   :  { %v1690_v52 = vpop.eup %1689  ;;  %v550_v53 = vmul.f32 %v1688_v51, %v547_v46  ;;  %vm555_vm3 = vweird.f32 %v1688_v51 }
 0x86f   :  { %v565_v55 = vmul.f32 %v1690_v52, %v548_v50  ;;  %vm570_vm4 = vweird.f32 %v1690_v52  ;;  %vm556_vm7 = vmor %vm554_vm5, %vm555_vm3 }
 0x870   :  { %v551_v56 = vsub.f32 1.0, %v550_v53  ;;  %vm571_vm10 = vmor %vm569_vm8, %vm570_vm4 }
 0x871   :  { %v566_v58 = vsub.f32 1.0, %v565_v55 }
 0x872   :  { %v552_v59 = vmul.f32 %v1688_v51, %v551_v56  ;;  %v1991_v19 = vpop.permute.xlu1 %777 }
 0x873   :  { %v567_v62 = vmul.f32 %v1690_v52, %v566_v58 }
 0x874   :  { %v553_v0 = vadd.f32 %v1688_v51, %v552_v59 }
 0x875   :  { %v568_v2 = vadd.f32 %v1690_v52, %v567_v62 }
 0x876   :  { %v557_v3 = vsel %vm556_vm7, %v1688_v51, %v553_v0 }
 0x877   :  { %v562_v6 = vsel %vm559_vm9, %v561_v1, %v557_v3  ;;  %v572_v7 = vsel %vm571_vm10, %v1690_v52, %v568_v2  ;;  %v746_v2 = vpop.permute.xlu2 %745 }
 0x878   :  { %v577_v8 = vsel %vm574_vm0, %v576_v5, %v572_v7  ;;  %v579_v9 = vmul.f32 %v562_v6, %v1953_v37 }
 0x879   :  { %v580_v10 = vmul.f32 %v577_v8, %v1955_v38 }
 0x87a   :  { %1502 = vmatmul.msk.f32.vlgmr.msra.gmra.mxu0 %vm495_vm6, %v579_v9 }
 0x87b   :  { %1511 = vmatmul.msk.f32.vlgmr.msra.gmra.mxu1 %vm495_vm6, %v580_v10  ;;  %vm680_vm6 = vcmask 31744   ;;  %v696_v22 = vpop.permute.xlu1 %695 }
 0x884   :  { %v728_v38 = vpop.permute.xlu1 %727 }
 0x88d   :  { %v782_v11 = vpop.permute.xlu1 %781 }
 0x8f7   :  { %v1982_v13 = vpop.f32.mrf.mxu0 }
 0x8f8   :  { %674 = vrot.lane.b32.xlu0 %v1982_v13, %s1843_s23  ;;  %v1985_v14 = vpop.f32.mrf.mxu1 }
 0x900   :  { %676 = vrot.lane.b32.xlu0 %v1985_v14, %s1843_s23 }
 0x908   :  { %813 = vperm.xlu0 %1617, %v1930_v47  }
 0x910   :  { %1622 = vset.pattern.permute.xlu0 %v1839_v49 }
 0x911   :  { %763 = vperm.xlu0 %1622, %v1967_v4  }
 0x96a   :  { %v675_v23 = vpop.permute.xlu0 %674 }
 0x96b   :  { %v681_v24 = vsel %vm680_vm6, 0.0, %v675_v23 }
 0x96c   :  { %v1997_v25 = vsel %vm683_vm11, %v681_v24, 0.0 }
 0x96d   :  { %v698_v26 = vperm.slane %v1997_v25, 0  ;;  %v712_v27 = vperm.slane %v1997_v25, 1  ;;  %v730_v28 = vperm.slane %v1997_v25, 2  ;;  %v748_v31 = vperm.slane %v1997_v25, 3 }
 0x96e   :  { %v766_v36 = vperm.slane %v1997_v25, 4  ;;  %v784_v37 = vperm.slane %v1997_v25, 5  ;;  %v802_v46 = vperm.slane %v1997_v25, 6  ;;  %v820_v59 = vperm.slane %v1997_v25, 7 }
 0x96f   :  { %v700_v29 = vmul.f32 %v698_v26, %v691_v15  ;;  %v714_v30 = vmul.f32 %v712_v27, %v706_v16  ;;  %v732_v35 = vmul.f32 %v730_v28, %v724_v20  ;;  %v750_v42 = vmul.f32 %v748_v31, %v742_v17 }
 0x970   :  { %v768_v49 = vmul.f32 %v766_v36, %v760_v18  ;;  %v786_v50 = vmul.f32 %v784_v37, %v1991_v19  ;;  %v701_v51 = vmul.f32 %v698_v26, %v696_v22  ;;  %v715_v57 = vmul.f32 %v712_v27, %v710_v32 }
 0x971   :  { %v718_v34 = vadd.f32 %v714_v30, %v700_v29  ;;  %v804_v63 = vmul.f32 %v802_v46, %v1993_v21 }
 0x972   :  { %v677_v33 = vpop.permute.xlu0 %676  ;;  %v719_v9 = vadd.f32 %v715_v57, %v701_v51 }
 0x973   :  { %v682_v39 = vsel %vm680_vm6, 0.0, %v677_v33  ;;  %v736_v41 = vadd.f32 %v732_v35, %v718_v34  ;;  %v751_v34 = vmul.f32 %v748_v31, %v746_v2 }
 0x974   :  { %v2007_v40 = vsel %vm683_vm11, %v682_v39, 0.0 }
 0x975   :  { %v699_v43 = vperm.slane %v2007_v40, 0  ;;  %v713_v44 = vperm.slane %v2007_v40, 1  ;;  %v731_v45 = vperm.slane %v2007_v40, 2  ;;  %v754_v48 = vadd.f32 %v750_v42, %v736_v41 }
 0x976   :  { %v749_v54 = vperm.slane %v2007_v40, 3  ;;  %v767_v62 = vperm.slane %v2007_v40, 4  ;;  %v785_v7 = vperm.slane %v2007_v40, 5  ;;  %v821_v30 = vperm.slane %v2007_v40, 7 }
 0x977   :  { %v702_v52 = vmul.f32 %v699_v43, %v691_v15  ;;  %v716_v53 = vmul.f32 %v713_v44, %v706_v16  ;;  %v772_v55 = vadd.f32 %v768_v49, %v754_v48  ;;  %v703_v56 = vmul.f32 %v699_v43, %v696_v22 }
 0x978   :  { %v717_v58 = vmul.f32 %v713_v44, %v710_v32  ;;  %v734_v61 = vmul.f32 %v731_v45, %v724_v20  ;;  %v752_v6 = vmul.f32 %v749_v54, %v742_v17  ;;  %v770_v15 = vmul.f32 %v767_v62, %v760_v18 }
 0x979   :  { %v720_v60 = vadd.f32 %v716_v53, %v702_v52  ;;  %v790_v1 = vadd.f32 %v786_v50, %v772_v55  ;;  %v803_v16 = vperm.slane %v2007_v40, 6  ;;  %v733_v22 = vmul.f32 %v730_v28, %v728_v38  ;;  %v818_v50 = vpop.permute.xlu1 %817 }
 0x97a   :  { %v814_v0 = vpop.permute.xlu0 %813  ;;  %v721_v10 = vadd.f32 %v717_v58, %v703_v56  ;;  %v735_v23 = vmul.f32 %v731_v45, %v728_v38  ;;  %v788_v26 = vmul.f32 %v785_v7, %v1991_v19  ;;  %v753_v18 = vmul.f32 %v749_v54, %v746_v2  ;;  %v800_v19 = vpop.permute.xlu2 %799 }
 0x97b   :  { %v822_v3 = vmul.f32 %v820_v59, %v814_v0  ;;  %v738_v5 = vadd.f32 %v734_v61, %v720_v60  ;;  %v808_v8 = vadd.f32 %v804_v63, %v790_v1  ;;  %v737_v17 = vadd.f32 %v733_v22, %v719_v9 }
 0x97c   :  { %v739_v29 = vadd.f32 %v735_v23, %v721_v10  ;;  %v806_v33 = vmul.f32 %v803_v16, %v1993_v21  ;;  %v824_v35 = vmul.f32 %v821_v30, %v814_v0  ;;  %v787_v45 = vmul.f32 %v784_v37, %v782_v11 }
 0x97d   :  { %v756_v12 = vadd.f32 %v752_v6, %v738_v5  ;;  %v826_v20 = vadd.f32 %v822_v3, %v808_v8  ;;  %v755_v28 = vadd.f32 %v751_v34, %v737_v17  ;;  %v789_v48 = vmul.f32 %v785_v7, %v782_v11 }
 0x97e   :  { %v757_v38 = vadd.f32 %v753_v18, %v739_v29  ;;  %v805_v31 = vmul.f32 %v802_v46, %v800_v19  ;;  %v807_v53 = vmul.f32 %v803_v16, %v800_v19  ;;  %v823_v54 = vmul.f32 %v820_v59, %v818_v50 }
 0x97f   :  { %v774_v24 = vadd.f32 %v770_v15, %v756_v12  ;;  %v831_v27 = vsel %vm830_vm12, %v826_v20, 0.0  ;;  %v1845_v22 = vmov 32   ;;  %v1846_v17 = vmov 36  }
 0x980   :  { %832 = vadd.xlane.f32.xlu2 %v831_v27  ;;  %1626 = vset.pattern.permute.xlu0 %v1845_v22 }
 0x981   :  { %v792_v32 = vadd.f32 %v788_v26, %v774_v24  ;;  %1628 = vset.pattern.permute.xlu2 %v1845_v22 }
 0x983   :  { %v764_v39 = vpop.permute.xlu0 %763  ;;  %v810_v41 = vadd.f32 %v806_v33, %v792_v32 }
 0x984   :  { %v769_v42 = vmul.f32 %v766_v36, %v764_v39  ;;  %v771_v43 = vmul.f32 %v767_v62, %v764_v39  ;;  %v825_v36 = vmul.f32 %v821_v30, %v818_v50  ;;  %v1847_v39 = vmov 34  }
 0x985   :  { %v828_v44 = vadd.f32 %v824_v35, %v810_v41 }
 0x986   :  { %v773_v40 = vadd.f32 %v769_v42, %v755_v28  ;;  %v775_v49 = vadd.f32 %v771_v43, %v757_v38 }
 0x987   :  { %v838_v21 = vsel %vm830_vm12, %v828_v44, 0.0 }
 0x988   :  { %v791_v51 = vadd.f32 %v787_v45, %v773_v40  ;;  %v793_v52 = vadd.f32 %v789_v48, %v775_v49  ;;  %839 = vadd.xlane.f32.xlu0 %v838_v21 }
 0x98a   :  { %v811_v55 = vadd.f32 %v807_v53, %v793_v52  ;;  %v809_v56 = vadd.f32 %v805_v31, %v791_v51  ;;  %v1848_v52 = vmov 35  }
 0x98c   :  { %v829_v57 = vadd.f32 %v825_v36, %v811_v55  ;;  %v827_v58 = vadd.f32 %v823_v54, %v809_v56 }
 0x98e   :  { %v841_v25 = vsel %vm834_vm13, %v829_v57, 0.0  ;;  %v835_v37 = vsel %vm834_vm13, %v827_v58, 0.0 }
 0x98f   :  { %842 = vadd.xlane.f32.xlu2 %v841_v25  ;;  %836 = vadd.xlane.f32.xlu1 %v835_v37 }
 0x9f3   :  { %v833_v60 = vpop.xlane.xlu2 %832 }
 0x9fb   :  { %v840_v61 = vpop.xlane.xlu0 %839 }
 0x9fc   :  { %v844_v46 = vadd.f32 %v840_v61, %v833_v60 }
 0x9fe   :  { %v846_v62 = vmul.f32 0.0125, %v844_v46 }
 0xa00   :  { %v2031_v63 = vsub.f32 %v826_v20, %v846_v62  ;;  %v2033_v0 = vsub.f32 %v828_v44, %v846_v62  ;;  %v1844_v20 = vmov 33  }
 0xa01   :  { %1627 = vset.pattern.permute.xlu1 %v1844_v20 }
 0xa02   :  { %v843_v59 = vpop.xlane.xlu2 %842  ;;  %v837_v1 = vpop.xlane.xlu1 %836  ;;  %v854_v2 = vmul.f32 %v2033_v0, %v2033_v0  ;;  %v852_v3 = vmul.f32 %v2031_v63, %v2031_v63 }
 0xa03   :  { %v845_v5 = vadd.f32 %v843_v59, %v837_v1 }
 0xa04   :  { %v862_v6 = vsel %vm830_vm12, %v854_v2, 0.0  ;;  %v856_v7 = vsel %vm830_vm12, %v852_v3, 0.0 }
 0xa05   :  { %v847_v8 = vmul.f32 0.0125, %v845_v5  ;;  %863 = vadd.xlane.f32.xlu0 %v862_v6  ;;  %857 = vadd.xlane.f32.xlu2 %v856_v7 }
 0xa07   :  { %v2041_v9 = vsub.f32 %v827_v58, %v847_v8  ;;  %v2043_v10 = vsub.f32 %v829_v57, %v847_v8 }
 0xa09   :  { %v853_v11 = vmul.f32 %v2041_v9, %v2041_v9  ;;  %v855_v12 = vmul.f32 %v2043_v10, %v2043_v10 }
 0xa0b   :  { %v859_v15 = vsel %vm834_vm13, %v853_v11, 0.0  ;;  %v865_v16 = vsel %vm834_vm13, %v855_v12, 0.0 }
 0xa0c   :  { %860 = vadd.xlane.f32.xlu1 %v859_v15 }
 0xa0d   :  { %866 = vadd.xlane.f32.xlu2 %v865_v16 }
 0xa25   :  { %911 = vperm.xlu1 %1627, %v1930_v47  }
 0xa2d   :  { %915 = vperm.xlu1 %1627, %v1967_v4  }
 0xa35   :  { %1630 = vset.pattern.permute.xlu1 %v1846_v17 }
 0xa36   :  { %1047 = vperm.xlu1 %1630, %v1930_v47  }
 0xa3e   :  { %1632 = vset.pattern.permute.xlu1 %v1847_v39 }
 0xa3f   :  { %1003 = vperm.xlu1 %1632, %v1930_v47  }
 0xa78   :  { %v864_v23 = vpop.xlane.xlu0 %863  ;;  %v858_v24 = vpop.xlane.xlu2 %857 }
 0xa79   :  { %v868_v26 = vadd.f32 %v864_v23, %v858_v24 }
 0xa7b   :  { %v870_v27 = vmul.f32 0.0125, %v868_v26 }
 0xa7d   :  { %v872_v29 = vadd.f32 1e-05, %v870_v27 }
 0xa7f   :  { %1691 = vrsqrt.f32 %v872_v29  ;;  %v861_v30 = vpop.xlane.xlu1 %860  ;;  %vm880_vm15 = vweird.f32 %v872_v29 }
 0xa80   :  { %v867_v32 = vpop.xlane.xlu2 %866 }
 0xa81   :  { %v869_v33 = vadd.f32 %v867_v32, %v861_v30 }
 0xa83   :  { %v871_v34 = vmul.f32 0.0125, %v869_v33 }
 0xa85   :  { %v1692_v18 = vpop.eup %1691  ;;  %v873_v35 = vadd.f32 1e-05, %v871_v34 }
 0xa86   :  { %v875_v41 = vmul.f32 %v1692_v18, %v872_v29  ;;  %vm881_vm14 = vweird.f32 %v1692_v18 }
 0xa87   :  { %1693 = vrsqrt.f32 %v873_v35  ;;  %vm882_vm1 = vmor %vm880_vm15, %vm881_vm14  ;;  %vm890_vm3 = vweird.f32 %v873_v35 }
 0xa88   :  { %v876_v28 = vmul.f32 %v1692_v18, %v875_v41 }
 0xa8a   :  { %v877_v38 = vmul.f32 0.5, %v876_v28 }
 0xa8c   :  { %v878_v42 = vsub.f32 1.5, %v877_v38 }
 0xa8d   :  { %v1694_v43 = vpop.eup %1693 }
 0xa8e   :  { %v885_v19 = vmul.f32 %v1694_v43, %v873_v35  ;;  %v879_v44 = vmul.f32 %v1692_v18, %v878_v42  ;;  %vm891_vm2 = vweird.f32 %v1694_v43 }
 0xa8f   :  { %vm892_vm4 = vmor %vm890_vm3, %vm891_vm2 }
 0xa90   :  { %v886_v45 = vmul.f32 %v1694_v43, %v885_v19  ;;  %v883_v48 = vsel %vm882_vm1, %v1692_v18, %v879_v44 }
 0xa91   :  { %v894_v40 = vmul.f32 %v883_v48, %v1930_v47 }
 0xa92   :  { %v887_v49 = vmul.f32 0.5, %v886_v45 }
 0xa93   :  { %898 = vperm.xlu0 %1626, %v894_v40  }
 0xa94   :  { %v888_v50 = vsub.f32 1.5, %v887_v49 }
 0xa96   :  { %v889_v21 = vmul.f32 %v1694_v43, %v888_v50 }
 0xa97   :  { %v912_v53 = vpop.permute.xlu1 %911 }
 0xa98   :  { %v893_v31 = vsel %vm892_vm4, %v1694_v43, %v889_v21 }
 0xa99   :  { %v895_v51 = vmul.f32 %v893_v31, %v1967_v4 }
 0xa9b   :  { %903 = vperm.xlu2 %1628, %v895_v51   ;;  %1631 = vset.pattern.permute.xlu0 %v1846_v17 }
 0xa9c   :  { %1051 = vperm.xlu0 %1631, %v1967_v4  }
 0xa9f   :  { %v916_v36 = vpop.permute.xlu1 %915 }
 0xaa3   :  { %1629 = vset.pattern.permute.xlu2 %v1848_v52 }
 0xaa4   :  { %1015 = vperm.xlu2 %1629, %v1930_v47  }
 0xaac   :  { %1019 = vperm.xlu2 %1629, %v1967_v4  }
 0xaf5   :  { %v904_v54 = vpop.permute.xlu2 %903 }
 0xaf6   :  { %v909_v55 = vmul.f32 %v904_v54, %v2043_v10  ;;  %v907_v57 = vmul.f32 %v904_v54, %v2041_v9 }
 0xaf8   :  { %v2061_v56 = vadd.f32 %v916_v36, %v909_v55  ;;  %v2065_v25 = vadd.f32 %v916_v36, %v907_v57 }
 0xafa   :  { %v1515_v58 = vmul.f32 -1.442695, %v2061_v56  ;;  %v1513_v37 = vmul.f32 -1.442695, %v2065_v25 }
 0xafc   :  { %1695 = vpow2.f32 %v1515_v58 }
 0xafd   :  { %1697 = vpow2.f32 %v1513_v37 }
 0xafe   :  { %v1016_v19 = vpop.permute.xlu2 %1015 }
 0xb02   :  { %v1696_v46 = vpop.eup %1695 }
 0xb03   :  { %v2070_v1 = vadd.f32 1.0, %v1696_v46  ;;  %v1698_v5 = vpop.eup %1697 }
 0xb04   :  { %v2073_v6 = vadd.f32 1.0, %v1698_v5 }
 0xb05   :  { %v899_v60 = vpop.permute.xlu0 %898  ;;  %vm988_vm7 = vweird.f32 %v2070_v1  ;;  %v994_v38 = vand.u32 2147483648, %v2070_v1  ;;  %v992_v44 = vand.u32 2147483647, %v2070_v1 }
 0xb06   :  { %v906_v47 = vmul.f32 %v899_v60, %v2031_v63  ;;  %v908_v61 = vmul.f32 %v899_v60, %v2033_v0  ;;  %v964_v58 = vand.u32 2147483648, %v2073_v6  ;;  %vm958_vm2 = vweird.f32 %v2073_v6 }
 0xb07   :  { %v995_v51 = vor.u32 1.1754944e-38, %v994_v38  ;;  %vm993_vm15 = vcmp.eq.f32.partialorder %v992_v44, 8.507059e+37  ;;  %v962_v37 = vand.u32 2147483647, %v2073_v6 }
 0xb08   :  { %v918_v62 = vadd.f32 %v912_v53, %v906_v47  ;;  %v920_v59 = vadd.f32 %v912_v53, %v908_v61  ;;  %v1048_v53 = vpop.permute.xlu1 %1047  ;;  %v1020_v61 = vpop.permute.xlu2 %1019  ;;  %v965_v46 = vor.u32 1.1754944e-38, %v964_v58  ;;  %v2125_v58 = vld [vmem:[#allocation2] sm:$0xff] }
 0xb09   :  { %vm963_vm4 = vcmp.eq.f32.partialorder %v962_v37, 8.507059e+37  ;;  %v1851_v37 = vmov 37  }
 0xb0a   :  { %v1512_v2 = vmul.f32 -1.442695, %v918_v62  ;;  %v1514_v3 = vmul.f32 -1.442695, %v920_v59  ;;  %1633 = vset.pattern.permute.xlu2 %v1851_v37 }
 0xb0c   :  { %1699 = vpow2.f32 %v1512_v2 }
 0xb0d   :  { %1701 = vpow2.f32 %v1514_v3 }
 0xb0e   :  { %1703 = vrcp.f32 %v2070_v1  ;;  %v1052_v3 = vpop.permute.xlu0 %1051 }
 0xb0f   :  { %1705 = vrcp.f32 %v2073_v6 }
 0xb12   :  { %v1700_v7 = vpop.eup %1699 }
 0xb13   :  { %v1702_v8 = vpop.eup %1701  ;;  %v934_v63 = vadd.f32 1.0, %v1700_v7 }
 0xb14   :  { %v1704_v9 = vpop.eup %1703  ;;  %v936_v0 = vadd.f32 1.0, %v1702_v8  ;;  %v1004_v8 = vpop.permute.xlu1 %1003 }
 0xb15   :  { %1707 = vrcp.f32 %v934_v63  ;;  %v984_v10 = vmul.f32 %v1704_v9, %v2070_v1  ;;  %v2077_v11 = vpop.eup %1705  ;;  %v949_v27 = vand.u32 2147483648, %v934_v63  ;;  %v947_v30 = vand.u32 2147483647, %v934_v63 }
 0xb16   :  { %1709 = vrcp.f32 %v936_v0  ;;  %v954_v23 = vmul.f32 %v2077_v11, %v2073_v6  ;;  %v979_v32 = vand.u32 2147483648, %v936_v0  ;;  %v977_v34 = vand.u32 2147483647, %v936_v0 }
 0xb17   :  { %v985_v15 = vsub.f32 1.0, %v984_v10  ;;  %vm989_vm9 = vweird.f32 %v1704_v9  ;;  %vm943_vm10 = vweird.f32 %v934_v63  ;;  %v950_v41 = vor.u32 1.1754944e-38, %v949_v27 }
 0xb18   :  { %v955_v18 = vsub.f32 1.0, %v954_v23  ;;  %vm973_vm6 = vweird.f32 %v936_v0  ;;  %vm948_vm11 = vcmp.eq.f32.partialorder %v947_v30, 8.507059e+37  ;;  %v980_v43 = vor.u32 1.1754944e-38, %v979_v32  ;;  %vm990_vm14 = vmor %vm988_vm7, %vm989_vm9 }
 0xb19   :  { %v986_v26 = vmul.f32 %v1704_v9, %v985_v15  ;;  %vm978_vm13 = vcmp.eq.f32.partialorder %v977_v34, 8.507059e+37  ;;  %vm959_vm1 = vweird.f32 %v2077_v11  ;;  %vm1082_vm7 = vcmask 253952  }
 0xb1a   :  { %v956_v40 = vmul.f32 %v2077_v11, %v955_v18  ;;  %vm960_vm3 = vmor %vm958_vm2, %vm959_vm1 }
 0xb1b   :  { %v1708_v12 = vpop.eup %1707  ;;  %v987_v39 = vadd.f32 %v1704_v9, %v986_v26 }
 0xb1c   :  { %v1710_v16 = vpop.eup %1709  ;;  %v939_v20 = vmul.f32 %v1708_v12, %v934_v63  ;;  %vm944_vm5 = vweird.f32 %v1708_v12  ;;  %v957_v36 = vadd.f32 %v2077_v11, %v956_v40 }
 0xb1d   :  { %v969_v22 = vmul.f32 %v1710_v16, %v936_v0  ;;  %vm974_vm8 = vweird.f32 %v1710_v16  ;;  %vm945_vm0 = vmor %vm943_vm10, %vm944_vm5  ;;  %v991_v21 = vsel %vm990_vm14, %v1704_v9, %v987_v39  ;;  %vm1078_vm5 = vcmask 261120  }
 0xb1e   :  { %v940_v24 = vsub.f32 1.0, %v939_v20  ;;  %vm975_vm12 = vmor %vm973_vm6, %vm974_vm8  ;;  %v996_v57 = vsel %vm993_vm15, %v995_v51, %v991_v21  ;;  %v961_v47 = vsel %vm960_vm3, %v2077_v11, %v957_v36 }
 0xb1f   :  { %v970_v17 = vsub.f32 1.0, %v969_v22  ;;  %v1001_v60 = vmul.f32 %v996_v57, %v2061_v56  ;;  %v1850_v57 = vmov 38  }
 0xb20   :  { %v941_v29 = vmul.f32 %v1708_v12, %v940_v24  ;;  %1634 = vset.pattern.permute.xlu0 %v1850_v57 }
 0xb21   :  { %v971_v33 = vmul.f32 %v1710_v16, %v970_v17  ;;  %v1025_v1 = vmul.f32 %v1020_v61, %v1001_v60  ;;  %v1057_v56 = vmul.f32 %v1052_v3, %v1001_v60 }
 0xb22   :  { %v942_v35 = vadd.f32 %v1708_v12, %v941_v29 }
 0xb23   :  { %v972_v28 = vadd.f32 %v1710_v16, %v971_v33 }
 0xb24   :  { %v946_v42 = vsel %vm945_vm0, %v1708_v12, %v942_v35 }
 0xb25   :  { %v951_v45 = vsel %vm948_vm11, %v950_v41, %v946_v42  ;;  %v976_v48 = vsel %vm975_vm12, %v1710_v16, %v972_v28 }
 0xb26   :  { %v981_v49 = vsel %vm978_vm13, %v980_v43, %v976_v48  ;;  %v998_v50 = vmul.f32 %v951_v45, %v918_v62 }
 0xb27   :  { %v1000_v31 = vmul.f32 %v981_v49, %v920_v59  ;;  %v966_v59 = vsel %vm963_vm4, %v965_v46, %v961_v47 }
 0xb28   :  { %v1022_v52 = vmul.f32 %v1016_v19, %v998_v50  ;;  %v1054_v62 = vmul.f32 %v1048_v53, %v998_v50  ;;  %v999_v2 = vmul.f32 %v966_v59, %v2065_v25  ;;  %v1010_v63 = vmul.f32 %v1004_v8, %v998_v50 }
 0xb29   :  { %v1024_v54 = vmul.f32 %v1016_v19, %v1000_v31  ;;  %v1056_v55 = vmul.f32 %v1048_v53, %v1000_v31  ;;  %v1012_v12 = vmul.f32 %v1004_v8, %v1000_v31  ;;  %v1852_v59 = vmov 43  }
 0xb2a   :  { %1030 = vrot.lane.b32.xlu2 %v1022_v52, %s1813_s0  ;;  %v1023_v5 = vmul.f32 %v1020_v61, %v999_v2  ;;  %v1055_v6 = vmul.f32 %v1052_v3, %v999_v2 }
 0xb2b   :  { %1066 = vrot.lane.b32.xlu0 %v1056_v55, %s1849_s24  ;;  %1034 = vrot.lane.b32.xlu1 %v1024_v54, %s1813_s0 }
 0xb32   :  { %1062 = vrot.lane.b32.xlu2 %v1054_v62, %s1849_s24 }
 0xb33   :  { %1007 = vperm.xlu1 %1632, %v1967_v4   ;;  %1036 = vrot.lane.b32.xlu0 %v1025_v1, %s1813_s0 }
 0xb3a   :  { %1032 = vrot.lane.b32.xlu2 %v1023_v5, %s1813_s0 }
 0xb3b   :  { %1064 = vrot.lane.b32.xlu1 %v1055_v6, %s1849_s24 }
 0xb3c   :  { %1635 = vset.pattern.permute.xlu1 %v1851_v37 }
 0xb42   :  { %1068 = vrot.lane.b32.xlu2 %v1057_v56, %s1849_s24 }
 0xb84   :  { %v1031_v7 = vpop.permute.xlu2 %1030 }
 0xb85   :  { %v1042_v9 = vadd.f32 %v1031_v7, %v1010_v63 }
 0xb8c   :  { %v1063_v0 = vpop.permute.xlu2 %1062 }
 0xb8d   :  { %v1074_v10 = vadd.f32 %v1063_v0, %v1042_v9 }
 0xb8f   :  { %v1079_v11 = vsel %vm1078_vm5, %v1074_v10, 0.0 }
 0xb90   :  { %1080 = vadd.xlane.f32.xlu0 %v1079_v11 }
 0xb94   :  { %v1033_v20 = vpop.permute.xlu2 %1032 }
 0xb9c   :  { %v1069_v30 = vpop.permute.xlu2 %1068 }
 0xb9d   :  { %v1067_v25 = vpop.permute.xlu0 %1066  ;;  %v1035_v15 = vpop.permute.xlu1 %1034 }
 0xb9e   :  { %v1044_v16 = vadd.f32 %v1035_v15, %v1012_v12 }
 0xba0   :  { %v1076_v22 = vadd.f32 %v1067_v25, %v1044_v16 }
 0xba2   :  { %v1086_v23 = vsel %vm1078_vm5, %v1076_v22, 0.0 }
 0xba3   :  { %1087 = vadd.xlane.f32.xlu1 %v1086_v23 }
 0xba5   :  { %v1008_v24 = vpop.permute.xlu1 %1007  ;;  %v1037_v27 = vpop.permute.xlu0 %1036 }
 0xba6   :  { %v1013_v26 = vmul.f32 %v1008_v24, %v1001_v60  ;;  %v1011_v17 = vmul.f32 %v1008_v24, %v999_v2 }
 0xba8   :  { %v1045_v29 = vadd.f32 %v1037_v27, %v1013_v26  ;;  %v1043_v33 = vadd.f32 %v1033_v20, %v1011_v17  ;;  %v1853_v26 = vmov 40   ;;  %v1854_v27 = vmov 39  }
 0xba9   :  { %v1855_v17 = vmov 42  }
 0xbaa   :  { %v1077_v32 = vadd.f32 %v1069_v30, %v1045_v29  ;;  %v1856_v29 = vmov 41   ;;  %v1857_v30 = vmov 45  }
 0xbac   :  { %v1089_v34 = vsel %vm1082_vm7, %v1077_v32, 0.0 }
 0xbad   :  { %v1065_v18 = vpop.permute.xlu1 %1064  ;;  %1090 = vadd.xlane.f32.xlu0 %v1089_v34 }
 0xbae   :  { %v1075_v35 = vadd.f32 %v1065_v18, %v1043_v33  ;;  %v1860_v33 = vmov 46  }
 0xbb0   :  { %v1083_v39 = vsel %vm1082_vm7, %v1075_v35, 0.0 }
 0xbb1   :  { %1084 = vadd.xlane.f32.xlu2 %v1083_v39 }
 0xc03   :  { %v1081_v41 = vpop.xlane.xlu0 %1080 }
 0xc16   :  { %v1088_v28 = vpop.xlane.xlu1 %1087 }
 0xc17   :  { %v1092_v38 = vadd.f32 %v1088_v28, %v1081_v41 }
 0xc19   :  { %v1094_v42 = vmul.f32 0.015625, %v1092_v38 }
 0xc1b   :  { %v2105_v43 = vsub.f32 %v1074_v10, %v1094_v42  ;;  %v2107_v19 = vsub.f32 %v1076_v22, %v1094_v42 }
 0xc1d   :  { %v1100_v44 = vmul.f32 %v2105_v43, %v2105_v43  ;;  %v1102_v45 = vmul.f32 %v2107_v19, %v2107_v19 }
 0xc1f   :  { %v1104_v48 = vsel %vm1078_vm5, %v1100_v44, 0.0  ;;  %v1110_v40 = vsel %vm1078_vm5, %v1102_v45, 0.0 }
 0xc20   :  { %1105 = vadd.xlane.f32.xlu1 %v1104_v48  ;;  %1111 = vadd.xlane.f32.xlu2 %v1110_v40  ;;  %v1091_v49 = vpop.xlane.xlu0 %1090 }
 0xc24   :  { %v1085_v50 = vpop.xlane.xlu2 %1084 }
 0xc25   :  { %v1093_v21 = vadd.f32 %v1091_v49, %v1085_v50 }
 0xc27   :  { %v1095_v31 = vmul.f32 0.015625, %v1093_v21 }
 0xc29   :  { %v2115_v51 = vsub.f32 %v1075_v35, %v1095_v31  ;;  %v2117_v52 = vsub.f32 %v1077_v32, %v1095_v31  ;;  %v1859_v32 = vmov 47  }
 0xc2b   :  { %v1103_v53 = vmul.f32 %v2117_v52, %v2117_v52  ;;  %v1101_v54 = vmul.f32 %v2115_v51, %v2115_v51 }
 0xc2d   :  { %v1113_v55 = vsel %vm1082_vm7, %v1103_v53, 0.0  ;;  %v1107_v36 = vsel %vm1082_vm7, %v1101_v54, 0.0 }
 0xc2e   :  { %1114 = vadd.xlane.f32.xlu1 %v1113_v55  ;;  %1108 = vadd.xlane.f32.xlu0 %v1107_v36 }
 0xc42   :  { %1159 = vperm.xlu0 %1634, %v2125_v58  }
 0xc4a   :  { %1641 = vset.pattern.permute.xlu0 %v1852_v59 }
 0xc4b   :  { %1289 = vperm.xlu0 %1641, %v2125_v58  }
 0xc93   :  { %v1106_v60 = vpop.xlane.xlu1 %1105  ;;  %v1112_v47 = vpop.xlane.xlu2 %1111 }
 0xc94   :  { %v1116_v61 = vadd.f32 %v1112_v47, %v1106_v60 }
 0xc96   :  { %v1118_v46 = vmul.f32 0.015625, %v1116_v61 }
 0xc98   :  { %v1120_v62 = vadd.f32 1e-05, %v1118_v46 }
 0xc9a   :  { %1711 = vrsqrt.f32 %v1120_v62  ;;  %vm1128_vm9 = vweird.f32 %v1120_v62 }
 0xca0   :  { %v1712_v1 = vpop.eup %1711 }
 0xca1   :  { %v1123_v2 = vmul.f32 %v1712_v1, %v1120_v62  ;;  %v1115_v3 = vpop.xlane.xlu1 %1114  ;;  %v1109_v5 = vpop.xlane.xlu0 %1108  ;;  %vm1129_vm8 = vweird.f32 %v1712_v1 }
 0xca2   :  { %v1117_v6 = vadd.f32 %v1115_v3, %v1109_v5  ;;  %vm1130_vm10 = vmor %vm1128_vm9, %vm1129_vm8 }
 0xca3   :  { %v1124_v56 = vmul.f32 %v1712_v1, %v1123_v2 }
 0xca4   :  { %v1119_v7 = vmul.f32 0.015625, %v1117_v6 }
 0xca5   :  { %v1125_v8 = vmul.f32 0.5, %v1124_v56 }
 0xca6   :  { %v1121_v63 = vadd.f32 1e-05, %v1119_v7 }
 0xca7   :  { %v1126_v9 = vsub.f32 1.5, %v1125_v8 }
 0xca8   :  { %1713 = vrsqrt.f32 %v1121_v63  ;;  %vm1138_vm6 = vweird.f32 %v1121_v63 }
 0xca9   :  { %v1127_v0 = vmul.f32 %v1712_v1, %v1126_v9 }
 0xcab   :  { %v1131_v10 = vsel %vm1130_vm10, %v1712_v1, %v1127_v0 }
 0xcac   :  { %v1142_v11 = vmul.f32 %v2125_v58, %v1131_v10 }
 0xcae   :  { %v1714_v12 = vpop.eup %1713  ;;  %1146 = vperm.xlu2 %1633, %v1142_v11  }
 0xcaf   :  { %v1133_v25 = vmul.f32 %v1714_v12, %v1121_v63  ;;  %vm1139_vm0 = vweird.f32 %v1714_v12 }
 0xcb0   :  { %vm1140_vm11 = vmor %vm1138_vm6, %vm1139_vm0 }
 0xcb1   :  { %v1134_v15 = vmul.f32 %v1714_v12, %v1133_v25 }
 0xcb3   :  { %v1135_v16 = vmul.f32 0.5, %v1134_v15 }
 0xcb4   :  { %v1160_v18 = vpop.permute.xlu0 %1159 }
 0xcb5   :  { %v1136_v20 = vsub.f32 1.5, %v1135_v16 }
 0xcb6   :  { %1636 = vset.pattern.permute.xlu2 %v1850_v57 }
 0xcb7   :  { %1163 = vperm.xlu2 %1636, %v1967_v4   ;;  %v1137_v22 = vmul.f32 %v1714_v12, %v1136_v20 }
 0xcb9   :  { %v1141_v23 = vsel %vm1140_vm11, %v1714_v12, %v1137_v22 }
 0xcba   :  { %v1143_v24 = vmul.f32 %v1141_v23, %v1967_v4  ;;  %v1858_v4 = vmov 44  }
 0xcbc   :  { %1151 = vperm.xlu1 %1635, %v1143_v24  }
 0xcbf   :  { %1638 = vset.pattern.permute.xlu2 %v1853_v26 }
 0xcc0   :  { %1259 = vperm.xlu2 %1638, %v2125_v58  }
 0xcc4   :  { %1637 = vset.pattern.permute.xlu1 %v1854_v27 }
 0xcc5   :  { %1251 = vperm.xlu1 %1637, %v2125_v58  }
 0xcc8   :  { %1640 = vset.pattern.permute.xlu2 %v1855_v17 }
 0xcc9   :  { %1279 = vperm.xlu2 %1640, %v2125_v58  }
 0xccd   :  { %1639 = vset.pattern.permute.xlu1 %v1856_v29 }
 0xcce   :  { %1269 = vperm.xlu1 %1639, %v2125_v58  }
 0xcd1   :  { %1643 = vset.pattern.permute.xlu2 %v1857_v30 }
 0xcd2   :  { %1309 = vperm.xlu2 %1643, %v2125_v58  }
 0xcd6   :  { %1642 = vset.pattern.permute.xlu1 %v1858_v4 }
 0xcd7   :  { %1299 = vperm.xlu1 %1642, %v2125_v58  }
 0xcda   :  { %1645 = vset.pattern.permute.xlu2 %v1859_v32 }
 0xcdb   :  { %1329 = vperm.xlu2 %1645, %v2125_v58  }
 0xcdf   :  { %1644 = vset.pattern.permute.xlu1 %v1860_v33 }
 0xce0   :  { %1319 = vperm.xlu1 %1644, %v2125_v58  }
 0xd08   :  { %v1147_v34 = vpop.permute.xlu2 %1146 }
 0xd09   :  { %v1154_v35 = vmul.f32 %v1147_v34, %v2105_v43  ;;  %v1156_v39 = vmul.f32 %v1147_v34, %v2107_v19 }
 0xd0b   :  { %v1166_v41 = vadd.f32 %v1160_v18, %v1154_v35  ;;  %v1168_v28 = vadd.f32 %v1160_v18, %v1156_v39 }
 0xd0d   :  { %v1516_v38 = vmul.f32 -1.442695, %v1166_v41  ;;  %v1518_v42 = vmul.f32 -1.442695, %v1168_v28 }
 0xd0f   :  { %1715 = vpow2.f32 %v1516_v38 }
 0xd10   :  { %1717 = vpow2.f32 %v1518_v42 }
 0xd11   :  { %v1164_v55 = vpop.permute.xlu2 %1163 }
 0xd15   :  { %v1716_v44 = vpop.eup %1715 }
 0xd16   :  { %v1718_v45 = vpop.eup %1717  ;;  %v1182_v48 = vadd.f32 1.0, %v1716_v44 }
 0xd17   :  { %v1184_v40 = vadd.f32 1.0, %v1718_v45 }
 0xd18   :  { %1719 = vrcp.f32 %v1182_v48  ;;  %v1197_v57 = vand.u32 2147483648, %v1182_v48  ;;  %vm1191_vm14 = vweird.f32 %v1182_v48  ;;  %v1195_v46 = vand.u32 2147483647, %v1182_v48 }
 0xd19   :  { %1721 = vrcp.f32 %v1184_v40  ;;  %v1227_v62 = vand.u32 2147483648, %v1184_v40  ;;  %vm1221_vm1 = vweird.f32 %v1184_v40  ;;  %v1225_v59 = vand.u32 2147483647, %v1184_v40 }
 0xd1a   :  { %v1198_v5 = vor.u32 1.1754944e-38, %v1197_v57  ;;  %vm1196_vm3 = vcmp.eq.f32.partialorder %v1195_v46, 8.507059e+37  ;;  %v1260_v63 = vpop.permute.xlu2 %1259 }
 0xd1b   :  { %vm1226_vm4 = vcmp.eq.f32.partialorder %v1225_v59, 8.507059e+37 }
 0xd1e   :  { %v1720_v49 = vpop.eup %1719 }
 0xd1f   :  { %v1722_v50 = vpop.eup %1721  ;;  %v1187_v21 = vmul.f32 %v1720_v49, %v1182_v48  ;;  %vm1192_vm12 = vweird.f32 %v1720_v49 }
 0xd20   :  { %v1217_v31 = vmul.f32 %v1722_v50, %v1184_v40  ;;  %vm1222_vm13 = vweird.f32 %v1722_v50  ;;  %vm1193_vm15 = vmor %vm1191_vm14, %vm1192_vm12 }
 0xd21   :  { %v1188_v53 = vsub.f32 1.0, %v1187_v21  ;;  %vm1223_vm2 = vmor %vm1221_vm1, %vm1222_vm13 }
 0xd22   :  { %v1218_v43 = vsub.f32 1.0, %v1217_v31 }
 0xd23   :  { %v1189_v54 = vmul.f32 %v1720_v49, %v1188_v53  ;;  %v1280_v29 = vpop.permute.xlu2 %1279 }
 0xd24   :  { %v1219_v19 = vmul.f32 %v1722_v50, %v1218_v43 }
 0xd25   :  { %v1190_v36 = vadd.f32 %v1720_v49, %v1189_v54 }
 0xd26   :  { %v1220_v60 = vadd.f32 %v1722_v50, %v1219_v19 }
 0xd27   :  { %v1194_v3 = vsel %vm1193_vm15, %v1720_v49, %v1190_v36 }
 0xd28   :  { %v1224_v6 = vsel %vm1223_vm2, %v1722_v50, %v1220_v60  ;;  %v1199_v7 = vsel %vm1196_vm3, %v1198_v5, %v1194_v3 }
 0xd29   :  { %v2150_v0 = vmul.f32 %v1199_v7, %v1166_v41  ;;  %v1290_v41 = vpop.permute.xlu0 %1289 }
 0xd2b   :  { %v1262_v25 = vperm.slane %v2150_v0, 1  ;;  %v1254_v22 = vperm.slane %v2150_v0, 0  ;;  %v1272_v24 = vperm.slane %v2150_v0, 2  ;;  %v1282_v18 = vperm.slane %v2150_v0, 3 }
 0xd2c   :  { %v1292_v35 = vperm.slane %v2150_v0, 4  ;;  %v1312_v44 = vperm.slane %v2150_v0, 6  ;;  %v1302_v19 = vperm.slane %v2150_v0, 5  ;;  %v1310_v5 = vpop.permute.xlu2 %1309 }
 0xd2d   :  { %v1264_v4 = vmul.f32 %v1262_v25, %v1260_v63  ;;  %v1284_v21 = vmul.f32 %v1282_v18, %v1280_v29 }
 0xd2e   :  { %v1152_v37 = vpop.permute.xlu1 %1151  ;;  %v1294_v31 = vmul.f32 %v1292_v35, %v1290_v41 }
 0xd2f   :  { %v1155_v47 = vmul.f32 %v1152_v37, %v2115_v51  ;;  %v1157_v61 = vmul.f32 %v1152_v37, %v2117_v52  ;;  %v1228_v52 = vor.u32 1.1754944e-38, %v1227_v62 }
 0xd31   :  { %v2144_v1 = vadd.f32 %v1164_v55, %v1155_v47  ;;  %v2146_v2 = vadd.f32 %v1164_v55, %v1157_v61  ;;  %v1229_v8 = vsel %vm1226_vm4, %v1228_v52, %v1224_v6 }
 0xd32   :  { %v2152_v10 = vmul.f32 %v1229_v8, %v1168_v28 }
 0xd33   :  { %v1517_v56 = vmul.f32 -1.442695, %v2144_v1  ;;  %v1519_v51 = vmul.f32 -1.442695, %v2146_v2 }
 0xd34   :  { %v1263_v16 = vperm.slane %v2152_v10, 1  ;;  %v1255_v23 = vperm.slane %v2152_v10, 0  ;;  %v1273_v17 = vperm.slane %v2152_v10, 2  ;;  %v1283_v39 = vperm.slane %v2152_v10, 3 }
 0xd35   :  { %1723 = vpow2.f32 %v1517_v56  ;;  %v1293_v48 = vperm.slane %v2152_v10, 4  ;;  %v1313_v53 = vperm.slane %v2152_v10, 6  ;;  %v1303_v55 = vperm.slane %v2152_v10, 5 }
 0xd36   :  { %1725 = vpow2.f32 %v1519_v51  ;;  %v1265_v32 = vmul.f32 %v1263_v16, %v1260_v63  ;;  %v1285_v54 = vmul.f32 %v1283_v39, %v1280_v29 }
 0xd37   :  { %v1252_v9 = vpop.permute.xlu1 %1251  ;;  %v1295_v3 = vmul.f32 %v1293_v48, %v1290_v41  ;;  %v1315_v29 = vmul.f32 %v1313_v53, %v1310_v5 }
 0xd38   :  { %v1256_v26 = vmul.f32 %v1254_v22, %v1252_v9  ;;  %v1257_v27 = vmul.f32 %v1255_v23, %v1252_v9 }
 0xd3a   :  { %v1266_v28 = vadd.f32 %v1264_v4, %v1256_v26  ;;  %v1267_v38 = vadd.f32 %v1265_v32, %v1257_v27 }
 0xd3b   :  { %v1724_v11 = vpop.eup %1723 }
 0xd3c   :  { %v1726_v12 = vpop.eup %1725  ;;  %v1183_v15 = vadd.f32 1.0, %v1724_v11 }
 0xd3d   :  { %v2156_v20 = vadd.f32 1.0, %v1726_v12 }
 0xd3e   :  { %1727 = vrcp.f32 %v1183_v15  ;;  %v1210_v57 = vand.u32 2147483647, %v1183_v15  ;;  %v1212_v37 = vand.u32 2147483648, %v1183_v15  ;;  %vm1206_vm9 = vweird.f32 %v1183_v15 }
 0xd3f   :  { %1729 = vrcp.f32 %v2156_v20  ;;  %v1242_v47 = vand.u32 2147483648, %v2156_v20  ;;  %v1240_v56 = vand.u32 2147483647, %v2156_v20  ;;  %vm1236_vm6 = vweird.f32 %v2156_v20 }
 0xd40   :  { %v1270_v30 = vpop.permute.xlu1 %1269  ;;  %vm1211_vm0 = vcmp.eq.f32.partialorder %v1210_v57, 8.507059e+37  ;;  %v1213_v8 = vor.u32 1.1754944e-38, %v1212_v37 }
 0xd41   :  { %v1274_v33 = vmul.f32 %v1272_v24, %v1270_v30  ;;  %v1275_v34 = vmul.f32 %v1273_v17, %v1270_v30  ;;  %v1243_v25 = vor.u32 1.1754944e-38, %v1242_v47  ;;  %vm1241_vm12 = vcmp.eq.f32.partialorder %v1240_v56, 8.507059e+37 }
 0xd42   :  { %v1322_v30 = vperm.slane %v2150_v0, 7 }
 0xd43   :  { %v1276_v40 = vadd.f32 %v1274_v33, %v1266_v28  ;;  %v1277_v49 = vadd.f32 %v1275_v34, %v1267_v38  ;;  %v1330_v34 = vpop.permute.xlu2 %1329 }
 0xd44   :  { %v1728_v42 = vpop.eup %1727 }
 0xd45   :  { %v1730_v45 = vpop.eup %1729  ;;  %v1202_v50 = vmul.f32 %v1728_v42, %v1183_v15  ;;  %v1286_v61 = vadd.f32 %v1284_v21, %v1276_v40  ;;  %v1287_v46 = vadd.f32 %v1285_v54, %v1277_v49  ;;  %vm1207_vm7 = vweird.f32 %v1728_v42 }
 0xd46   :  { %v1232_v43 = vmul.f32 %v1730_v45, %v2156_v20  ;;  %vm1237_vm8 = vweird.f32 %v1730_v45  ;;  %vm1208_vm10 = vmor %vm1206_vm9, %vm1207_vm7  ;;  %v1314_v15 = vmul.f32 %v1312_v44, %v1310_v5  ;;  %v1323_v20 = vperm.slane %v2152_v10, 7 }
 0xd47   :  { %v1203_v36 = vsub.f32 1.0, %v1202_v50  ;;  %v1296_v9 = vadd.f32 %v1294_v31, %v1286_v61  ;;  %v1297_v11 = vadd.f32 %v1295_v3, %v1287_v46  ;;  %vm1238_vm11 = vmor %vm1236_vm6, %vm1237_vm8 }
 0xd48   :  { %v1233_v60 = vsub.f32 1.0, %v1232_v43 }
 0xd49   :  { %v1300_v62 = vpop.permute.xlu1 %1299  ;;  %v1204_v59 = vmul.f32 %v1728_v42, %v1203_v36 }
 0xd4a   :  { %v1234_v6 = vmul.f32 %v1730_v45, %v1233_v60  ;;  %v1304_v51 = vmul.f32 %v1302_v19, %v1300_v62  ;;  %v1305_v52 = vmul.f32 %v1303_v55, %v1300_v62  ;;  %v1861_v19 = vmov 48  }
 0xd4b   :  { %v1205_v7 = vadd.f32 %v1728_v42, %v1204_v59  ;;  %1646 = vset.pattern.permute.xlu1 %v1861_v19  ;;  %v1862_v55 = vmov 49  }
 0xd4c   :  { %v1235_v63 = vadd.f32 %v1730_v45, %v1234_v6  ;;  %v1306_v23 = vadd.f32 %v1304_v51, %v1296_v9  ;;  %v1307_v24 = vadd.f32 %v1305_v52, %v1297_v11  ;;  %1647 = vset.pattern.permute.xlu2 %v1862_v55  ;;  %1648 = vset.pattern.permute.xlu0 %v1862_v55 }
 0xd4d   :  { %v1209_v12 = vsel %vm1208_vm10, %v1728_v42, %v1205_v7 }
 0xd4e   :  { %v1214_v16 = vsel %vm1211_vm0, %v1213_v8, %v1209_v12  ;;  %v1239_v22 = vsel %vm1238_vm11, %v1730_v45, %v1235_v63  ;;  %v1316_v18 = vadd.f32 %v1314_v15, %v1306_v23  ;;  %v1317_v35 = vadd.f32 %v1315_v29, %v1307_v24 }
 0xd4f   :  { %v1244_v26 = vsel %vm1241_vm12, %v1243_v25, %v1239_v22  ;;  %v1247_v27 = vmul.f32 %v1214_v16, %v2144_v1 }
 0xd50   :  { %v1249_v17 = vmul.f32 %v1244_v26, %v2146_v2 }
 0xd51   :  { %v1332_v4 = vperm.slane %v1247_v27, 0 }
 0xd52   :  { %v1320_v32 = vpop.permute.xlu1 %1319  ;;  %v1333_v33 = vperm.slane %v1249_v17, 0 }
 0xd53   :  { %v1324_v39 = vmul.f32 %v1322_v30, %v1320_v32  ;;  %v1325_v41 = vmul.f32 %v1323_v20, %v1320_v32  ;;  %v1334_v42 = vmul.f32 %v1332_v4, %v1330_v34 }
 0xd54   :  { %v1335_v1 = vmul.f32 %v1333_v33, %v1330_v34 }
 0xd55   :  { %v1326_v28 = vadd.f32 %v1324_v39, %v1316_v18  ;;  %v1327_v38 = vadd.f32 %v1325_v41, %v1317_v35 }
 0xd57   :  { %v1337_v44 = vadd.f32 %v1335_v1, %v1327_v38  ;;  %v1336_v45 = vadd.f32 %v1334_v42, %v1326_v28 }
 0xd59   :  { %v1341_v2 = vsel %vm1078_vm5, %v1337_v44, 0.0  ;;  %v1338_v0 = vsel %vm1078_vm5, %v1336_v45, 0.0 }
 0xd5a   :  { %1342 = vadd.xlane.f32.xlu1 %v1341_v2  ;;  %1339 = vadd.xlane.f32.xlu0 %v1338_v0 }
 0xdcd   :  { %v1343_v10 = vpop.xlane.xlu1 %1342  ;;  %v1340_v48 = vpop.xlane.xlu0 %1339 }
 0xdce   :  { %v1344_v40 = vadd.f32 %v1343_v10, %v1340_v48 }
 0xdd0   :  { %v1345_v49 = vmul.f32 0.015625, %v1344_v40 }
 0xdd2   :  { %v1346_v50 = vsub.f32 %v1336_v45, %v1345_v49  ;;  %v1347_v21 = vsub.f32 %v1337_v44, %v1345_v49 }
 0xdd4   :  { %v1349_v31 = vmul.f32 %v1347_v21, %v1347_v21  ;;  %v1348_v53 = vmul.f32 %v1346_v50, %v1346_v50 }
 0xdd6   :  { %v1353_v43 = vsel %vm1078_vm5, %v1349_v31, 0.0  ;;  %v1350_v54 = vsel %vm1078_vm5, %v1348_v53, 0.0 }
 0xdd7   :  { %1354 = vadd.xlane.f32.xlu0 %v1353_v43  ;;  %1351 = vadd.xlane.f32.xlu2 %v1350_v54 }
 0xdef   :  { %1378 = vperm.xlu2 %1647, %v2125_v58  }
 0xe4a   :  { %v1355_v36 = vpop.xlane.xlu0 %1354  ;;  %v1352_v57 = vpop.xlane.xlu2 %1351 }
 0xe4b   :  { %v1356_v37 = vadd.f32 %v1355_v36, %v1352_v57 }
 0xe4d   :  { %v1357_v60 = vmul.f32 0.015625, %v1356_v37 }
 0xe4f   :  { %v1358_v47 = vadd.f32 1e-05, %v1357_v60 }
 0xe51   :  { %1731 = vrsqrt.f32 %v1358_v47  ;;  %vm1365_vm14 = vweird.f32 %v1358_v47 }
 0xe52   :  { %v1379_v52 = vpop.permute.xlu2 %1378 }
 0xe57   :  { %v1732_v61 = vpop.eup %1731 }
 0xe58   :  { %v1360_v46 = vmul.f32 %v1732_v61, %v1358_v47  ;;  %vm1366_vm13 = vweird.f32 %v1732_v61 }
 0xe59   :  { %vm1367_vm15 = vmor %vm1365_vm14, %vm1366_vm13 }
 0xe5a   :  { %v1361_v62 = vmul.f32 %v1732_v61, %v1360_v46 }
 0xe5c   :  { %v1362_v59 = vmul.f32 0.5, %v1361_v62 }
 0xe5e   :  { %v1363_v3 = vsub.f32 1.5, %v1362_v59 }
 0xe60   :  { %v1364_v5 = vmul.f32 %v1732_v61, %v1363_v3 }
 0xe62   :  { %v1368_v6 = vsel %vm1367_vm15, %v1732_v61, %v1364_v5 }
 0xe63   :  { %v1369_v56 = vmul.f32 %v2125_v58, %v1368_v6 }
 0xe65   :  { %1372 = vperm.xlu1 %1646, %v1369_v56  }
 0xed7   :  { %v1373_v51 = vpop.permute.xlu1 %1372 }
 0xed8   :  { %v1375_v7 = vmul.f32 %v1373_v51, %v1346_v50  ;;  %v1376_v8 = vmul.f32 %v1373_v51, %v1347_v21 }
 0xeda   :  { %v1381_v63 = vadd.f32 %v1379_v52, %v1375_v7  ;;  %v1382_v9 = vadd.f32 %v1379_v52, %v1376_v8 }
 0xedc   :  { %v1520_v11 = vmul.f32 -1.442695, %v1381_v63  ;;  %v1521_v12 = vmul.f32 -1.442695, %v1382_v9 }
 0xede   :  { %1733 = vpow2.f32 %v1520_v11 }
 0xedf   :  { %1735 = vpow2.f32 %v1521_v12 }
 0xee4   :  { %v1734_v25 = vpop.eup %1733 }
 0xee5   :  { %v1736_v16 = vpop.eup %1735  ;;  %v1389_v22 = vadd.f32 1.0, %v1734_v25 }
 0xee6   :  { %v1390_v23 = vadd.f32 1.0, %v1736_v16 }
 0xee7   :  { %1737 = vrcp.f32 %v1389_v22  ;;  %v1402_v17 = vand.u32 2147483648, %v1389_v22  ;;  %v1400_v20 = vand.u32 2147483647, %v1389_v22  ;;  %vm1396_vm3 = vweird.f32 %v1389_v22 }
 0xee8   :  { %1739 = vrcp.f32 %v1390_v23  ;;  %v1417_v4 = vand.u32 2147483648, %v1390_v23  ;;  %v1415_v33 = vand.u32 2147483647, %v1390_v23  ;;  %vm1411_vm7 = vweird.f32 %v1390_v23 }
 0xee9   :  { %v1403_v18 = vor.u32 1.1754944e-38, %v1402_v17  ;;  %vm1401_vm8 = vcmp.eq.f32.partialorder %v1400_v20, 8.507059e+37 }
 0xeea   :  { %v1418_v41 = vor.u32 1.1754944e-38, %v1417_v4  ;;  %vm1416_vm10 = vcmp.eq.f32.partialorder %v1415_v33, 8.507059e+37 }
 0xeed   :  { %v1738_v24 = vpop.eup %1737 }
 0xeee   :  { %v1740_v26 = vpop.eup %1739  ;;  %v1392_v58 = vmul.f32 %v1738_v24, %v1389_v22  ;;  %vm1397_vm1 = vweird.f32 %v1738_v24 }
 0xeef   :  { %v1407_v27 = vmul.f32 %v1740_v26, %v1390_v23  ;;  %vm1412_vm2 = vweird.f32 %v1740_v26  ;;  %vm1398_vm4 = vmor %vm1396_vm3, %vm1397_vm1 }
 0xef0   :  { %v1393_v15 = vsub.f32 1.0, %v1392_v58  ;;  %vm1413_vm9 = vmor %vm1411_vm7, %vm1412_vm2 }
 0xef1   :  { %v1408_v29 = vsub.f32 1.0, %v1407_v27 }
 0xef2   :  { %v1394_v30 = vmul.f32 %v1738_v24, %v1393_v15 }
 0xef3   :  { %v1409_v32 = vmul.f32 %v1740_v26, %v1408_v29 }
 0xef4   :  { %v1395_v34 = vadd.f32 %v1738_v24, %v1394_v30 }
 0xef5   :  { %v1410_v35 = vadd.f32 %v1740_v26, %v1409_v32 }
 0xef6   :  { %v1399_v39 = vsel %vm1398_vm4, %v1738_v24, %v1395_v34 }
 0xef7   :  { %v1404_v28 = vsel %vm1401_vm8, %v1403_v18, %v1399_v39  ;;  %v1414_v38 = vsel %vm1413_vm9, %v1740_v26, %v1410_v35 }
 0xef8   :  { %v1419_v42 = vsel %vm1416_vm10, %v1418_v41, %v1414_v38  ;;  %v1421_v1 = vmul.f32 %v1404_v28, %v1381_v63 }
 0xef9   :  { %v1422_v44 = vmul.f32 %v1419_v42, %v1382_v9 }
 0xefa   :  { %v1423_v45 = vadd.f32 %v1421_v1, %v1982_v13 }
 0xefb   :  { %v1424_v2 = vadd.f32 %v1422_v44, %v1985_v14 }
 0xefc   :  { %v1522_v0 = vmul.f32 -1.442695, %v1423_v45 }
 0xefd   :  { %v1523_v10 = vmul.f32 -1.442695, %v1424_v2 }
 0xefe   :  { %1741 = vpow2.f32 %v1522_v0 }
 0xeff   :  { %1743 = vpow2.f32 %v1523_v10 }
 0xf04   :  { %v1742_v48 = vpop.eup %1741 }
 0xf05   :  { %v1744_v40 = vpop.eup %1743  ;;  %v1431_v49 = vadd.f32 1.0, %v1742_v48 }
 0xf06   :  { %v1432_v50 = vadd.f32 1.0, %v1744_v40 }
 0xf07   :  { %1745 = vrcp.f32 %v1431_v49  ;;  %v1444_v19 = vand.u32 2147483648, %v1431_v49  ;;  %v1442_v14 = vand.u32 2147483647, %v1431_v49  ;;  %vm1438_vm11 = vweird.f32 %v1431_v49 }
 0xf08   :  { %1747 = vrcp.f32 %v1432_v50  ;;  %v1459_v36 = vand.u32 2147483648, %v1432_v50  ;;  %v1457_v37 = vand.u32 2147483647, %v1432_v50  ;;  %vm1453_vm13 = vweird.f32 %v1432_v50 }
 0xf09   :  { %v1445_v47 = vor.u32 1.1754944e-38, %v1444_v19  ;;  %vm1443_vm14 = vcmp.eq.f32.partialorder %v1442_v14, 8.507059e+37 }
 0xf0a   :  { %v1460_v62 = vor.u32 1.1754944e-38, %v1459_v36  ;;  %vm1458_vm1 = vcmp.eq.f32.partialorder %v1457_v37, 8.507059e+37 }
 0xf0d   :  { %v1746_v21 = vpop.eup %1745 }
 0xf0e   :  { %v1748_v31 = vpop.eup %1747  ;;  %v1434_v53 = vmul.f32 %v1746_v21, %v1431_v49  ;;  %vm1439_vm0 = vweird.f32 %v1746_v21 }
 0xf0f   :  { %v1449_v43 = vmul.f32 %v1748_v31, %v1432_v50  ;;  %vm1454_vm6 = vweird.f32 %v1748_v31  ;;  %vm1440_vm12 = vmor %vm1438_vm11, %vm1439_vm0 }
 0xf10   :  { %v1435_v54 = vsub.f32 1.0, %v1434_v53  ;;  %vm1455_vm15 = vmor %vm1453_vm13, %vm1454_vm6 }
 0xf11   :  { %v1450_v55 = vsub.f32 1.0, %v1449_v43 }
 0xf12   :  { %v1436_v13 = vmul.f32 %v1746_v21, %v1435_v54 }
 0xf13   :  { %v1451_v57 = vmul.f32 %v1748_v31, %v1450_v55 }
 0xf14   :  { %v1437_v60 = vadd.f32 %v1746_v21, %v1436_v13 }
 0xf15   :  { %v1452_v61 = vadd.f32 %v1748_v31, %v1451_v57 }
 0xf16   :  { %v1441_v46 = vsel %vm1440_vm12, %v1746_v21, %v1437_v60 }
 0xf17   :  { %v1446_v59 = vsel %vm1443_vm14, %v1445_v47, %v1441_v46  ;;  %v1456_v3 = vsel %vm1455_vm15, %v1748_v31, %v1452_v61 }
 0xf18   :  { %v1461_v5 = vsel %vm1458_vm1, %v1460_v62, %v1456_v3  ;;  %v1463_v6 = vmul.f32 %v1446_v59, %v1423_v45 }
 0xf19   :  { %v1464_v56 = vmul.f32 %v1461_v5, %v1424_v2 }
 0xf1a   :  { %1465 = vst.msk [vmem:[#allocation5] sm:$0xff] %vm1078_vm5, %v1463_v6 }
 0xf1b   :  { %1466 = vst.msk [vmem:[#allocation5 + $0x8] sm:$0xff] %vm1078_vm5, %v1464_v56 }
 0xf1c   :  { %1479 = dma.vmem_to_hbm [thread:$0]  %s1472_s26, 256, %s1474_s29, [#allocation4], %s1803_s14, %s1803_s14, %s1804_s15  }
 0xf1d   :  { %1800 = dma.done.wait [#allocation4], 256  }
 0xf1e   :  { %1801 = vsyncadd [#allocation4], 4294967040 }
 0xf1f   :  { %1484 = vsyncpa [#allocation3], 1 }
 0xf20   :  { %1485 = vsyncpa [#allocation4], 1 }

</bundles_post_ra>
